<compile_context>
chip_gen: v6e
topology: v6e:2x2x1
jax: 0.10.0
libtpu: 0.0.40
codegen_flags: <defaults>
</compile_context>

<pallas_src>
import functools
import math

import jax
import jax.numpy as jnp
from jax import lax
from jax.experimental import pallas as pl
from jax.experimental.pallas import tpu as pltpu

# f32 inputs keep full-precision MXU passes so the kernel matches the torch
# module's f32 math; pass mxu_dtype=jnp.bfloat16 for the native-rate MXU path
# (f32 accumulation and f32 softmax either way).
jax.config.update("jax_default_matmul_precision", "highest")


def mha_kernel(q_ref, k_ref, v_ref, wq_ref, wk_ref, wv_ref, wo_ref, o_ref,
               *, num_heads, head_dim, scale, mxu_dtype):
    """One (batch, q_tile) step of multi-head attention.

    q_ref : (1, q_tile, dim)            k_ref / v_ref : (1, kv_len, dim)
    wq_ref/wk_ref/wv_ref/wo_ref : (dim, dim)  (resident, fetched once)
    o_ref : (1, q_tile, dim)
    """
    cast = (lambda x: x.astype(mxu_dtype)) if mxu_dtype is not None else (lambda x: x)

    q = cast(q_ref[0])
    k = cast(k_ref[0])
    v = cast(v_ref[0])

    # Fat per-batch projections: MXU N dimension = dim (not head_dim).
    qh = jnp.dot(q, cast(wq_ref[...]), preferred_element_type=jnp.float32)
    kh = jnp.dot(k, cast(wk_ref[...]), preferred_element_type=jnp.float32)
    vh = jnp.dot(v, cast(wv_ref[...]), preferred_element_type=jnp.float32)

    # TODO(synk): optional boolean attention mask (masked_fill with -inf) is not
    # wired up; the module's forward default (mask=None) is what is implemented.
    heads = []
    for h in range(num_heads):
        sl = slice(h * head_dim, (h + 1) * head_dim)
        qh_h = cast(qh[:, sl] * scale)          # fold 1/sqrt(hd) into q (fewer muls)
        kh_h = cast(kh[:, sl])
        vh_h = cast(vh[:, sl])
        # NT matmul (contract last dims of both) -- no explicit transpose of kh_h.
        s = lax.dot_general(qh_h, kh_h, (((1,), (1,)), ((), ())),
                            preferred_element_type=jnp.float32)
        m = jnp.max(s, axis=-1, keepdims=True)
        p = jnp.exp(s - m)                      # unnormalized probs, f32
        l = jnp.sum(p, axis=-1, keepdims=True)
        oh = jnp.dot(cast(p), vh_h, preferred_element_type=jnp.float32)
        # Deferred softmax normalization: one EUP reciprocal + (q_tile, hd) muls.
        heads.append(oh * pl.reciprocal(l, approx=True))

    attn_out = cast(jnp.concatenate(heads, axis=-1))          # (q_tile, dim)
    # Single fused output projection with the full Wo (K = dim).
    o_ref[0] = jnp.dot(attn_out, cast(wo_ref[...]),
                       preferred_element_type=jnp.float32).astype(o_ref.dtype)


def _choose_q_tile(q_len):
    if q_len <= 512:
        return q_len
    for t in (512, 256, 128):
        if q_len % t == 0:
            return t
    return q_len  # TODO(synk): mask ragged q tiles for awkward sequence lengths


def _nbytes(shape, dtype):
    return math.prod(shape) * jnp.dtype(dtype).itemsize


@functools.partial(jax.jit, static_argnames=("num_heads", "mxu_dtype"))
def mha_forward(q, k, v, wq, wk, wv, wo, *, num_heads, mxu_dtype=None):
    """Matches MultiheadAttention.forward with mask=None.

    q: (q_len, bsz, dim), k/v: (kv_len, bsz, dim); weights stored as (in, out)
    (transpose of torch nn.Linear.weight).  Returns (q_len, bsz, dim).
    """
    q_len, bsz, dim = q.shape
    kv_len = k.shape[0]
    assert v.shape[0] == kv_len, "k_len must equal v_len"
    assert dim % num_heads == 0
    head_dim = dim // num_heads
    scale = 1.0 / math.sqrt(head_dim)

    # (len, bsz, dim) -> (bsz, len, dim): feature dim on the lane axis.
    q_b = jnp.transpose(q, (1, 0, 2))
    k_b = jnp.transpose(k, (1, 0, 2))
    v_b = jnp.transpose(v, (1, 0, 2))

    q_tile = _choose_q_tile(q_len)
    n_q = q_len // q_tile
    dt = q.dtype

    # VMEM budget: double-buffered streamed blocks + resident weights + 50%
    # headroom, capped at 3/4 of physical VMEM.
    # TODO(synk): for kv_len >> 4K, add a kv grid axis with online softmax so the
    # (q_tile, kv_len) f32 score tile stays bounded (matters most on v7x).
    streamed = 2 * (2 * _nbytes((q_tile, dim), dt) + 2 * _nbytes((kv_len, dim), dt))
    resident = 4 * _nbytes((dim, dim), dt)
    try:
        vmem_cap = pltpu.get_tpu_info().vmem_capacity_bytes
    except Exception:
        vmem_cap = 64 << 20          # conservative (v7x) fallback
    vmem_limit = int(min(max(3 * (streamed + resident) // 2, 8 << 20),
                         3 * vmem_cap // 4))

    flops = 2 * bsz * dim * ((q_len + 2 * kv_len) * dim   # q/k/v projections
                             + 2 * q_len * kv_len         # scores + PV (all heads)
                             + q_len * dim)               # output projection
    cost = pl.CostEstimate(
        flops=flops,
        transcendentals=bsz * num_heads * q_len * kv_len,
        bytes_accessed=(_nbytes(q.shape, dt) + _nbytes(k.shape, dt)
                        + _nbytes(v.shape, dt) + _nbytes((q_len, bsz, dim), dt)
                        + 4 * _nbytes((dim, dim), dt)),    # weights fetched once
    )

    kernel = functools.partial(mha_kernel, num_heads=num_heads,
                               head_dim=head_dim, scale=scale,
                               mxu_dtype=mxu_dtype)

    out_b = pl.pallas_call(
        kernel,
        out_shape=jax.ShapeDtypeStruct((bsz, q_len, dim), dt),
        grid_spec=pltpu.PrefetchScalarGridSpec(
            num_scalar_prefetch=0,
            grid=(bsz, n_q),
            in_specs=[
                pl.BlockSpec((1, q_tile, dim), lambda b, qi: (b, qi, 0)),   # q
                pl.BlockSpec((1, kv_len, dim), lambda b, qi: (b, 0, 0)),    # k
                pl.BlockSpec((1, kv_len, dim), lambda b, qi: (b, 0, 0)),    # v
                pl.BlockSpec((dim, dim), lambda b, qi: (0, 0)),             # Wq (resident)
                pl.BlockSpec((dim, dim), lambda b, qi: (0, 0)),             # Wk (resident)
                pl.BlockSpec((dim, dim), lambda b, qi: (0, 0)),             # Wv (resident)
                pl.BlockSpec((dim, dim), lambda b, qi: (0, 0)),             # Wo (resident)
            ],
            out_specs=pl.BlockSpec((1, q_tile, dim), lambda b, qi: (b, qi, 0)),
        ),
        compiler_params=pltpu.CompilerParams(
            dimension_semantics=("parallel", "parallel"),
            vmem_limit_bytes=vmem_limit,
        ),
        cost_estimate=cost,
    )(q_b, k_b, v_b, wq, wk, wv, wo)

    return jnp.transpose(out_b, (1, 0, 2))   # back to (q_len, bsz, dim)


def init_mha_params(key, dim, dtype=jnp.float32):
    """torch.nn.Linear(dim, dim, bias=False) default init, stored as (in, out)."""
    kq, kk, kv, ko = jax.random.split(key, 4)
    bound = 1.0 / math.sqrt(dim)
    shape = (dim, dim)
    wq = jax.random.uniform(kq, shape, dtype, -bound, bound)
    wk = jax.random.uniform(kk, shape, dtype, -bound, bound)
    wv = jax.random.uniform(kv, shape, dtype, -bound, bound)
    wo = jax.random.uniform(ko, shape, dtype, -bound, bound)
    return wq, wk, wv, wo


def mha_reference(q, k, v, wq, wk, wv, wo, num_heads):
    """Plain-JAX replica of MultiheadAttention.forward (mask=None)."""
    q_len, bsz, dim = q.shape
    k_len, v_len = k.shape[0], v.shape[0]
    hd = dim // num_heads
    qp = (q @ wq).reshape(q_len, bsz * num_heads, hd).transpose(1, 0, 2)
    kp = (k @ wk).reshape(k_len, bsz * num_heads, hd).transpose(1, 0, 2)
    vp = (v @ wv).reshape(v_len, bsz * num_heads, hd).transpose(1, 0, 2)
    s = (qp @ kp.transpose(0, 2, 1)) / math.sqrt(hd)
    p = jax.nn.softmax(s, axis=-1)
    o = (p @ vp).transpose(1, 0, 2).reshape(q_len, bsz, dim)
    return o @ wo


if __name__ == "__main__":
    key = jax.random.PRNGKey(0)
    kq, kk, kv, kp = jax.random.split(key, 4)

    q_len, kv_len, bsz, dim, num_heads = 8, 8, 2, 32, 4
    q = jax.random.normal(kq, (q_len, bsz, dim), jnp.float32)
    k = jax.random.normal(kk, (kv_len, bsz, dim), jnp.float32)
    v = jax.random.normal(kv, (kv_len, bsz, dim), jnp.float32)
    wq, wk, wv, wo = init_mha_params(kp, dim)

    ref = mha_reference(q, k, v, wq, wk, wv, wo, num_heads)

    # f32 MXU path (matches the torch module's f32 math; tolerance allows the
    # approximate EUP reciprocal used for deferred softmax normalization).
    out = jax.block_until_ready(
        mha_forward(q, k, v, wq, wk, wv, wo, num_heads=num_heads))
    assert out.shape == (q_len, bsz, dim)
    err = float(jnp.max(jnp.abs(out - ref)))
    assert jnp.allclose(out, ref, atol=5e-3, rtol=5e-3), f"max abs err {err}"

    # bf16-MXU fast path (f32 accumulation + f32 softmax): looser tolerance.
    out_bf16 = jax.block_until_ready(
        mha_forward(q, k, v, wq, wk, wv, wo, num_heads=num_heads,
                    mxu_dtype=jnp.bfloat16))
    err_bf16 = float(jnp.max(jnp.abs(out_bf16 - ref)))
    assert jnp.allclose(out_bf16, ref, atol=5e-2, rtol=5e-2), \
        f"max abs err (bf16 MXU) {err_bf16}"

    print("KERNEL_OK")
</pallas_src>

<mosaic_0001>
module attributes {stable_mosaic.version = 11 : i64} {
  func.func @mha_kernel(%arg0: i32, %arg1: i32, %arg2: memref<1x8x32xf32, #tpu.memory_space<vmem>>, %arg3: memref<1x8x32xf32, #tpu.memory_space<vmem>>, %arg4: memref<1x8x32xf32, #tpu.memory_space<vmem>>, %arg5: memref<32x32xf32, #tpu.memory_space<vmem>>, %arg6: memref<32x32xf32, #tpu.memory_space<vmem>>, %arg7: memref<32x32xf32, #tpu.memory_space<vmem>>, %arg8: memref<32x32xf32, #tpu.memory_space<vmem>>, %arg9: memref<1x8x32xf32, #tpu.memory_space<vmem>>) attributes {dimension_semantics = [#tpu.dimension_semantics<parallel>, #tpu.dimension_semantics<parallel>], iteration_bounds = array<i64: 2, 1>, scalar_prefetch = 0 : i64, scratch_operands = 0 : i64, tpu.core_type = #tpu.core_type<tc>, window_params = [{transform_indices = @transform_0, window_bounds = array<i64: 1, 8, 32>}, {transform_indices = @transform_1, window_bounds = array<i64: 1, 8, 32>}, {transform_indices = @transform_2, window_bounds = array<i64: 1, 8, 32>}, {pipeline_mode = #tpu.pipeline_mode<synchronous>, transform_indices = @transform_3, window_bounds = array<i64: 32, 32>}, {pipeline_mode = #tpu.pipeline_mode<synchronous>, transform_indices = @transform_4, window_bounds = array<i64: 32, 32>}, {pipeline_mode = #tpu.pipeline_mode<synchronous>, transform_indices = @transform_5, window_bounds = array<i64: 32, 32>}, {pipeline_mode = #tpu.pipeline_mode<synchronous>, transform_indices = @transform_6, window_bounds = array<i64: 32, 32>}, {transform_indices = @transform_7, window_bounds = array<i64: 1, 8, 32>}]} {
    %c0 = arith.constant 0 : index
    %c0_0 = arith.constant 0 : index
    %c0_1 = arith.constant 0 : index
    %0 = vector.load %arg2[%c0, %c0_0, %c0_1] : memref<1x8x32xf32, #tpu.memory_space<vmem>>, vector<1x8x32xf32>
    %1 = vector.shape_cast %0 : vector<1x8x32xf32> to vector<8x32xf32>
    %c0_2 = arith.constant 0 : index
    %c0_3 = arith.constant 0 : index
    %c0_4 = arith.constant 0 : index
    %2 = vector.load %arg3[%c0_2, %c0_3, %c0_4] : memref<1x8x32xf32, #tpu.memory_space<vmem>>, vector<1x8x32xf32>
    %3 = vector.shape_cast %2 : vector<1x8x32xf32> to vector<8x32xf32>
    %c0_5 = arith.constant 0 : index
    %c0_6 = arith.constant 0 : index
    %c0_7 = arith.constant 0 : index
    %4 = vector.load %arg4[%c0_5, %c0_6, %c0_7] : memref<1x8x32xf32, #tpu.memory_space<vmem>>, vector<1x8x32xf32>
    %5 = vector.shape_cast %4 : vector<1x8x32xf32> to vector<8x32xf32>
    %c0_8 = arith.constant 0 : index
    %c0_9 = arith.constant 0 : index
    %6 = vector.load %arg5[%c0_8, %c0_9] : memref<32x32xf32, #tpu.memory_space<vmem>>, vector<32x32xf32>
    %cst = arith.constant dense<0.000000e+00> : vector<8x32xf32>
    %7 = tpu.matmul %1, %6, %cst {dimension_numbers = #tpu.dot_dimension_numbers<[1], [0], [0], [1], [0, 0, 1, 1], [], []>, precision = #tpu.contract_precision<fp32>} : vector<8x32xf32>, vector<32x32xf32>, vector<8x32xf32> -> vector<8x32xf32>
    %c0_10 = arith.constant 0 : index
    %c0_11 = arith.constant 0 : index
    %8 = vector.load %arg6[%c0_10, %c0_11] : memref<32x32xf32, #tpu.memory_space<vmem>>, vector<32x32xf32>
    %cst_12 = arith.constant dense<0.000000e+00> : vector<8x32xf32>
    %9 = tpu.matmul %3, %8, %cst_12 {dimension_numbers = #tpu.dot_dimension_numbers<[1], [0], [0], [1], [0, 0, 1, 1], [], []>, precision = #tpu.contract_precision<fp32>} : vector<8x32xf32>, vector<32x32xf32>, vector<8x32xf32> -> vector<8x32xf32>
    %c0_13 = arith.constant 0 : index
    %c0_14 = arith.constant 0 : index
    %10 = vector.load %arg7[%c0_13, %c0_14] : memref<32x32xf32, #tpu.memory_space<vmem>>, vector<32x32xf32>
    %cst_15 = arith.constant dense<0.000000e+00> : vector<8x32xf32>
    %11 = tpu.matmul %5, %10, %cst_15 {dimension_numbers = #tpu.dot_dimension_numbers<[1], [0], [0], [1], [0, 0, 1, 1], [], []>, precision = #tpu.contract_precision<fp32>} : vector<8x32xf32>, vector<32x32xf32>, vector<8x32xf32> -> vector<8x32xf32>
    %12 = vector.extract_strided_slice %7 {offsets = [0, 0], sizes = [8, 8], strides = [1, 1]} : vector<8x32xf32> to vector<8x8xf32>
    %cst_16 = arith.constant 0.353553385 : f32
    %13 = vector.broadcast %cst_16 : f32 to vector<8x8xf32>
    %14 = arith.mulf %12, %13 : vector<8x8xf32>
    %15 = vector.extract_strided_slice %9 {offsets = [0, 0], sizes = [8, 8], strides = [1, 1]} : vector<8x32xf32> to vector<8x8xf32>
    %16 = vector.extract_strided_slice %11 {offsets = [0, 0], sizes = [8, 8], strides = [1, 1]} : vector<8x32xf32> to vector<8x8xf32>
    %cst_17 = arith.constant dense<0.000000e+00> : vector<8x8xf32>
    %17 = tpu.matmul %14, %15, %cst_17 {dimension_numbers = #tpu.dot_dimension_numbers<[1], [1], [0], [0], [0, 0, 1, 0], [], []>, precision = #tpu.contract_precision<fp32>} : vector<8x8xf32>, vector<8x8xf32>, vector<8x8xf32> -> vector<8x8xf32>
    %cst_18 = arith.constant dense<0xFF800000> : vector<8xf32>
    %18 = vector.multi_reduction <maximumf>, %17, %cst_18 [1] : vector<8x8xf32> to vector<8xf32>
    %19 = vector.shape_cast %18 : vector<8xf32> to vector<8x1xf32>
    %20 = vector.broadcast %19 : vector<8x1xf32> to vector<8x8xf32>
    %21 = arith.subf %17, %20 : vector<8x8xf32>
    %22 = math.exp %21 : vector<8x8xf32>
    %cst_19 = arith.constant dense<0.000000e+00> : vector<8xf32>
    %23 = vector.multi_reduction <add>, %22, %cst_19 [1] : vector<8x8xf32> to vector<8xf32>
    %24 = vector.shape_cast %23 : vector<8xf32> to vector<8x1xf32>
    %cst_20 = arith.constant dense<0.000000e+00> : vector<8x8xf32>
    %25 = tpu.matmul %22, %16, %cst_20 {dimension_numbers = #tpu.dot_dimension_numbers<[1], [0], [0], [1], [0, 0, 1, 1], [], []>, precision = #tpu.contract_precision<fp32>} : vector<8x8xf32>, vector<8x8xf32>, vector<8x8xf32> -> vector<8x8xf32>
    %26 = tpu.reciprocal %24 {approx = true} : vector<8x1xf32> -> vector<8x1xf32>
    %27 = vector.broadcast %26 : vector<8x1xf32> to vector<8x8xf32>
    %28 = arith.mulf %25, %27 : vector<8x8xf32>
    %29 = vector.extract_strided_slice %7 {offsets = [0, 8], sizes = [8, 8], strides = [1, 1]} : vector<8x32xf32> to vector<8x8xf32>
    %cst_21 = arith.constant 0.353553385 : f32
    %30 = vector.broadcast %cst_21 : f32 to vector<8x8xf32>
    %31 = arith.mulf %29, %30 : vector<8x8xf32>
    %32 = vector.extract_strided_slice %9 {offsets = [0, 8], sizes = [8, 8], strides = [1, 1]} : vector<8x32xf32> to vector<8x8xf32>
    %33 = vector.extract_strided_slice %11 {offsets = [0, 8], sizes = [8, 8], strides = [1, 1]} : vector<8x32xf32> to vector<8x8xf32>
    %cst_22 = arith.constant dense<0.000000e+00> : vector<8x8xf32>
    %34 = tpu.matmul %31, %32, %cst_22 {dimension_numbers = #tpu.dot_dimension_numbers<[1], [1], [0], [0], [0, 0, 1, 0], [], []>, precision = #tpu.contract_precision<fp32>} : vector<8x8xf32>, vector<8x8xf32>, vector<8x8xf32> -> vector<8x8xf32>
    %cst_23 = arith.constant dense<0xFF800000> : vector<8xf32>
    %35 = vector.multi_reduction <maximumf>, %34, %cst_23 [1] : vector<8x8xf32> to vector<8xf32>
    %36 = vector.shape_cast %35 : vector<8xf32> to vector<8x1xf32>
    %37 = vector.broadcast %36 : vector<8x1xf32> to vector<8x8xf32>
    %38 = arith.subf %34, %37 : vector<8x8xf32>
    %39 = math.exp %38 : vector<8x8xf32>
    %cst_24 = arith.constant dense<0.000000e+00> : vector<8xf32>
    %40 = vector.multi_reduction <add>, %39, %cst_24 [1] : vector<8x8xf32> to vector<8xf32>
    %41 = vector.shape_cast %40 : vector<8xf32> to vector<8x1xf32>
    %cst_25 = arith.constant dense<0.000000e+00> : vector<8x8xf32>
    %42 = tpu.matmul %39, %33, %cst_25 {dimension_numbers = #tpu.dot_dimension_numbers<[1], [0], [0], [1], [0, 0, 1, 1], [], []>, precision = #tpu.contract_precision<fp32>} : vector<8x8xf32>, vector<8x8xf32>, vector<8x8xf32> -> vector<8x8xf32>
    %43 = tpu.reciprocal %41 {approx = true} : vector<8x1xf32> -> vector<8x1xf32>
    %44 = vector.broadcast %43 : vector<8x1xf32> to vector<8x8xf32>
    %45 = arith.mulf %42, %44 : vector<8x8xf32>
    %46 = vector.extract_strided_slice %7 {offsets = [0, 16], sizes = [8, 8], strides = [1, 1]} : vector<8x32xf32> to vector<8x8xf32>
    %cst_26 = arith.constant 0.353553385 : f32
    %47 = vector.broadcast %cst_26 : f32 to vector<8x8xf32>
    %48 = arith.mulf %46, %47 : vector<8x8xf32>
    %49 = vector.extract_strided_slice %9 {offsets = [0, 16], sizes = [8, 8], strides = [1, 1]} : vector<8x32xf32> to vector<8x8xf32>
    %50 = vector.extract_strided_slice %11 {offsets = [0, 16], sizes = [8, 8], strides = [1, 1]} : vector<8x32xf32> to vector<8x8xf32>
    %cst_27 = arith.constant dense<0.000000e+00> : vector<8x8xf32>
    %51 = tpu.matmul %48, %49, %cst_27 {dimension_numbers = #tpu.dot_dimension_numbers<[1], [1], [0], [0], [0, 0, 1, 0], [], []>, precision = #tpu.contract_precision<fp32>} : vector<8x8xf32>, vector<8x8xf32>, vector<8x8xf32> -> vector<8x8xf32>
    %cst_28 = arith.constant dense<0xFF800000> : vector<8xf32>
    %52 = vector.multi_reduction <maximumf>, %51, %cst_28 [1] : vector<8x8xf32> to vector<8xf32>
    %53 = vector.shape_cast %52 : vector<8xf32> to vector<8x1xf32>
    %54 = vector.broadcast %53 : vector<8x1xf32> to vector<8x8xf32>
    %55 = arith.subf %51, %54 : vector<8x8xf32>
    %56 = math.exp %55 : vector<8x8xf32>
    %cst_29 = arith.constant dense<0.000000e+00> : vector<8xf32>
    %57 = vector.multi_reduction <add>, %56, %cst_29 [1] : vector<8x8xf32> to vector<8xf32>
    %58 = vector.shape_cast %57 : vector<8xf32> to vector<8x1xf32>
    %cst_30 = arith.constant dense<0.000000e+00> : vector<8x8xf32>
    %59 = tpu.matmul %56, %50, %cst_30 {dimension_numbers = #tpu.dot_dimension_numbers<[1], [0], [0], [1], [0, 0, 1, 1], [], []>, precision = #tpu.contract_precision<fp32>} : vector<8x8xf32>, vector<8x8xf32>, vector<8x8xf32> -> vector<8x8xf32>
    %60 = tpu.reciprocal %58 {approx = true} : vector<8x1xf32> -> vector<8x1xf32>
    %61 = vector.broadcast %60 : vector<8x1xf32> to vector<8x8xf32>
    %62 = arith.mulf %59, %61 : vector<8x8xf32>
    %63 = vector.extract_strided_slice %7 {offsets = [0, 24], sizes = [8, 8], strides = [1, 1]} : vector<8x32xf32> to vector<8x8xf32>
    %cst_31 = arith.constant 0.353553385 : f32
    %64 = vector.broadcast %cst_31 : f32 to vector<8x8xf32>
    %65 = arith.mulf %63, %64 : vector<8x8xf32>
    %66 = vector.extract_strided_slice %9 {offsets = [0, 24], sizes = [8, 8], strides = [1, 1]} : vector<8x32xf32> to vector<8x8xf32>
    %67 = vector.extract_strided_slice %11 {offsets = [0, 24], sizes = [8, 8], strides = [1, 1]} : vector<8x32xf32> to vector<8x8xf32>
    %cst_32 = arith.constant dense<0.000000e+00> : vector<8x8xf32>
    %68 = tpu.matmul %65, %66, %cst_32 {dimension_numbers = #tpu.dot_dimension_numbers<[1], [1], [0], [0], [0, 0, 1, 0], [], []>, precision = #tpu.contract_precision<fp32>} : vector<8x8xf32>, vector<8x8xf32>, vector<8x8xf32> -> vector<8x8xf32>
    %cst_33 = arith.constant dense<0xFF800000> : vector<8xf32>
    %69 = vector.multi_reduction <maximumf>, %68, %cst_33 [1] : vector<8x8xf32> to vector<8xf32>
    %70 = vector.shape_cast %69 : vector<8xf32> to vector<8x1xf32>
    %71 = vector.broadcast %70 : vector<8x1xf32> to vector<8x8xf32>
    %72 = arith.subf %68, %71 : vector<8x8xf32>
    %73 = math.exp %72 : vector<8x8xf32>
    %cst_34 = arith.constant dense<0.000000e+00> : vector<8xf32>
    %74 = vector.multi_reduction <add>, %73, %cst_34 [1] : vector<8x8xf32> to vector<8xf32>
    %75 = vector.shape_cast %74 : vector<8xf32> to vector<8x1xf32>
    %cst_35 = arith.constant dense<0.000000e+00> : vector<8x8xf32>
    %76 = tpu.matmul %73, %67, %cst_35 {dimension_numbers = #tpu.dot_dimension_numbers<[1], [0], [0], [1], [0, 0, 1, 1], [], []>, precision = #tpu.contract_precision<fp32>} : vector<8x8xf32>, vector<8x8xf32>, vector<8x8xf32> -> vector<8x8xf32>
    %77 = tpu.reciprocal %75 {approx = true} : vector<8x1xf32> -> vector<8x1xf32>
    %78 = vector.broadcast %77 : vector<8x1xf32> to vector<8x8xf32>
    %79 = arith.mulf %76, %78 : vector<8x8xf32>
    %80 = tpu.concatenate %28, %45, %62, %79 in 1 : vector<8x8xf32>, vector<8x8xf32>, vector<8x8xf32>, vector<8x8xf32> -> vector<8x32xf32>
    %c0_36 = arith.constant 0 : index
    %c0_37 = arith.constant 0 : index
    %81 = vector.load %arg8[%c0_36, %c0_37] : memref<32x32xf32, #tpu.memory_space<vmem>>, vector<32x32xf32>
    %cst_38 = arith.constant dense<0.000000e+00> : vector<8x32xf32>
    %82 = tpu.matmul %80, %81, %cst_38 {dimension_numbers = #tpu.dot_dimension_numbers<[1], [0], [0], [1], [0, 0, 1, 1], [], []>, precision = #tpu.contract_precision<fp32>} : vector<8x32xf32>, vector<32x32xf32>, vector<8x32xf32> -> vector<8x32xf32>
    %c0_39 = arith.constant 0 : index
    %c0_40 = arith.constant 0 : index
    %c0_41 = arith.constant 0 : index
    %83 = vector.load %arg9[%c0_39, %c0_40, %c0_41] : memref<1x8x32xf32, #tpu.memory_space<vmem>>, vector<1x8x32xf32>
    %84 = vector.shape_cast %83 : vector<1x8x32xf32> to vector<8x32xf32>
    %85 = vector.shape_cast %82 : vector<8x32xf32> to vector<1x8x32xf32>
    tpu.vector_store %arg9[%c0_39, %c0_40, %c0_41], %85 {strides = array<i32>} : memref<1x8x32xf32, #tpu.memory_space<vmem>>, vector<1x8x32xf32>,
    return
  }
  func.func @transform_0(%arg0: i32, %arg1: i32) -> (i32, i32, i32) {
    %c0_i32 = arith.constant 0 : i32
    %c0_i32_0 = arith.constant 0 : i32
    return %arg0, %arg1, %c0_i32 : i32, i32, i32
  }
  func.func @transform_1(%arg0: i32, %arg1: i32) -> (i32, i32, i32) {
    %c0_i32 = arith.constant 0 : i32
    %c0_i32_0 = arith.constant 0 : i32
    %c0_i32_1 = arith.constant 0 : i32
    return %arg0, %c0_i32, %c0_i32_0 : i32, i32, i32
  }
  func.func @transform_2(%arg0: i32, %arg1: i32) -> (i32, i32, i32) {
    %c0_i32 = arith.constant 0 : i32
    %c0_i32_0 = arith.constant 0 : i32
    %c0_i32_1 = arith.constant 0 : i32
    return %arg0, %c0_i32, %c0_i32_0 : i32, i32, i32
  }
  func.func @transform_3(%arg0: i32, %arg1: i32) -> (i32, i32) {
    %c0_i32 = arith.constant 0 : i32
    %c0_i32_0 = arith.constant 0 : i32
    %c0_i32_1 = arith.constant 0 : i32
    return %c0_i32, %c0_i32_0 : i32, i32
  }
  func.func @transform_4(%arg0: i32, %arg1: i32) -> (i32, i32) {
    %c0_i32 = arith.constant 0 : i32
    %c0_i32_0 = arith.constant 0 : i32
    %c0_i32_1 = arith.constant 0 : i32
    return %c0_i32, %c0_i32_0 : i32, i32
  }
  func.func @transform_5(%arg0: i32, %arg1: i32) -> (i32, i32) {
    %c0_i32 = arith.constant 0 : i32
    %c0_i32_0 = arith.constant 0 : i32
    %c0_i32_1 = arith.constant 0 : i32
    return %c0_i32, %c0_i32_0 : i32, i32
  }
  func.func @transform_6(%arg0: i32, %arg1: i32) -> (i32, i32) {
    %c0_i32 = arith.constant 0 : i32
    %c0_i32_0 = arith.constant 0 : i32
    %c0_i32_1 = arith.constant 0 : i32
    return %c0_i32, %c0_i32_0 : i32, i32
  }
  func.func @transform_7(%arg0: i32, %arg1: i32) -> (i32, i32, i32) {
    %c0_i32 = arith.constant 0 : i32
    %c0_i32_0 = arith.constant 0 : i32
    return %arg0, %arg1, %c0_i32 : i32, i32, i32
  }
}

</mosaic_0001>

<bundles_post_ra>
// kernel: mha_forward.1
= control target key start
LH: loop header
LB: loop body
LE: loop exit
PB: predicated region body
PF: predicated region fallthrough
CT: control target
= control target key end

     0   :  { %12 = vsyncpa [#allocation3], 0  ;;  %s7020_s24 = smov 0   ;;  %s7022_s25 = smov 0   ;;  %s7772_s0 = inlined_call_operand.vmem [shape: f32[2,8,32], index: 0, kind: input, shape index: {}]   ;;  %s7773_s1 = inlined_call_operand.vmem [shape: f32[2,8,32], index: 1, kind: input, shape index: {}]   ;;  %s7774_s2 = inlined_call_operand.vmem [shape: f32[2,8,32], index: 2, kind: input, shape index: {}]   ;;  %s7775_s3 = inlined_call_operand.vmem [shape: f32[32,32], index: 3, kind: input, shape index: {}]   ;;  %s7776_s4 = inlined_call_operand.vmem [shape: f32[32,32], index: 4, kind: input, shape index: {}]   ;;  %s7777_s5 = inlined_call_operand.vmem [shape: f32[32,32], index: 5, kind: input, shape index: {}]   ;;  %s7778_s6 = inlined_call_operand.hbm [shape: f32[32,32], index: 6, kind: input, shape index: {}]   ;;  %s7779_s7 = inlined_call_operand.vmem [shape: f32[2,8,32], index: 7, kind: output, shape index: {}]  }
   0x1   :  { %s7024_s26 = smov 0  }
   0x2 LB: > { %s6121_s27 = sadd.s32 4294967295, %s6967_s26   ;;  %s30_s28 = sadd.s32 1, %s6963_s25  ;;  %s6967_s26 = sphi %s7024_s26, %s18_s26   ;;  %s6963_s25 = sphi %s7022_s25, %s7783_s25   ;;  %s6959_s24 = sphi %s7020_s24, %s7782_s24  }
   0x3   : > { %p32_p0 = scmp.ge.s32.totalorder %s30_s28, 2  ;;  %p6123_p1 = scmp.ge.s32.totalorder %s6967_s26, 1 }
   0x4   : > { %p227_p2 = scmp.lt.s32.totalorder %s6967_s26, 3  ;;  %p7045_p4 = scmp.eq.s32.totalorder %s6121_s27, 0 }
   0x5   : > { %s7785_s28 = smov (%p32_p0, %s30_s28), 0  ;;  %s6969_s8 = smov [#allocation2]  }
   0x6   : > { %p7041_p3 = pnand %p6123_p1, %p227_p2  ;;  %s248_s9 = sshll.u32 %s6969_s8, 4  ;;  %s249_s9 = int_to_ptr.vmem [resolvable:$true] %s248_s9 }
   0x7   : > { %s6926_s10 = scalar_lea.vmem %s249_s9, 512  ;;  %p6934_p11 = scmp.lt.s32.totalorder %s249_s9, %s249_s9 }
   0x8   : > { %p6858_p5 = pneg %p7041_p3  ;;  %p6927_p8 = scmp.ne.s32.totalorder %s249_s9, %s6926_s10 }
   0x9   : > { %p6935_p12 = scmp.lt.s32.totalorder %s6926_s10, %s6926_s10 }
   0xa   : > { %p6859_p6 = pnand %p7045_p4, %p6858_p5 }
   0xb   : > { %p6936_p13 = por %p6935_p12, %p6934_p11 }
   0xc   : > { %p6917_p7 = pneg %p6859_p6 }
   0xe   : > { %p6929_p9 = pnand %p6927_p8, %p6917_p7 }
  0x10   : > { %p6930_p10 = pneg %p6929_p9 }
  0x12   : > { %p6937_p0 = pnand %p6936_p13, %p6930_p10 }
  0x14   : > { %6940 = shalt.err (!%p6937_p0)
}
  0x15   : > { %s6970_s11 = smov 128   ;;  %s6971_s12 = smov 8  }
  0x16   : > { %6861 = dma.hbm_to_vmem [thread:$0]  (!%p6859_p6), %s7778_s6, 512, %s249_s9, [#allocation3], %s6970_s11, %s6970_s11, %s6971_s12  }
  0x17   : > { %288 = sbr.rel (%p7041_p3) target bundleno = 2384 (0x950), region = 48 }
  0x1c   : > { %6954 = dma.done.wait (%p7045_p4), [#allocation3], 512  }
  0x1d   : > { %6956 = vsyncadd (%p7045_p4), [#allocation3], 4294966784  ;;  %p332_p1 = scmp.lt.s32.totalorder %s6959_s24, 1  ;;  %v6972_v0 = vmov 0.0   ;;  %vm6973_vm0 = vmmov 0   ;;  %vm361_vm1 = vcmask 261120  }
  0x1e   : > { %6350 = vmatprep.subr.mxu0 %v6972_v0  ;;  %6361 = vmatprep.subr.mxu1 %v6972_v0  ;;  %v360_v1 = vld [vmem:[%s7775_s3 + $0x18] sm:$0xff]  ;;  %v359_v2 = vld [vmem:[%s7775_s3 + $0x10] sm:$0xff]  ;;  %v358_v3 = vld [vmem:[%s7775_s3 + $0x8] sm:$0xff]  ;;  %s6974_s10 = smov 120   ;;  %vm1835_vm2 = vcmask 64512   ;;  %s6975_s11 = smov 112  }
  0x1f   : > { %6358 = vmatprep.mubr.msk.f32.mxu0 %vm6973_vm0, %v6972_v0  ;;  %s7787_s24 = smov (!%p332_p1, %s6959_s24), 1  ;;  %6369 = vmatprep.mubr.msk.f32.mxu1 %vm6973_vm0, %v6972_v0  ;;  %v7085_v4 = vand.u32 4294901760, %v360_v1  ;;  %v7087_v5 = vand.u32 4294901760, %v359_v2  ;;  %v7089_v6 = vand.u32 4294901760, %v358_v3  ;;  %v357_v7 = vld [vmem:[%s7775_s3] sm:$0xff]  ;;  %v853_v33 = vld [vmem:[%s7776_s4 + $0x18] sm:$0xff] }
  0x20   : > { %s7070_s15 = sshll.u32 %s7787_s24, 3  ;;  %v7094_v9 = vand.u32 4294901760, %v357_v7  ;;  %v7153_v35 = vand.u32 4294901760, %v853_v33  ;;  %v852_v36 = vld [vmem:[%s7776_s4 + $0x10] sm:$0xff]  ;;  %v851_v37 = vld [vmem:[%s7776_s4 + $0x8] sm:$0xff]  ;;  %v850_v41 = vld [vmem:[%s7776_s4] sm:$0xff] }
  0x21   : > { %s338_s18 = scalar_lea.vmem %s7772_s0, %s7070_s15  ;;  %6351 = vmatpush3.msra.mxu0 %v7085_v4  ;;  %v470_v11 = vsub.f32 %v360_v1, %v7085_v4  ;;  %v7102_v13 = vsub.f32 %v359_v2, %v7087_v5  ;;  %v7105_v14 = vsub.f32 %v358_v3, %v7089_v6  ;;  %s342_s9 = scalar_lea.vmem %s7773_s1, %s7070_s15  ;;  %v7168_v39 = vand.u32 4294901760, %v852_v36  ;;  %v1345_v63 = vld [vmem:[%s7777_s5 + $0x18] sm:$0xff]  ;;  %v1344_v3 = vld [vmem:[%s7777_s5 + $0x10] sm:$0xff] }
  0x22   : > { %v354_v8 = vld [vmem:[%s338_s18] sm:$0xff]  ;;  %6352 = vmatprep.subr.mxu0 %v6972_v0  ;;  %v7109_v15 = vsub.f32 %v357_v7, %v7094_v9  ;;  %v7173_v40 = vsub.f32 %v853_v33, %v7153_v35  ;;  %v7179_v42 = vand.u32 4294901760, %v851_v37  ;;  %v7192_v45 = vand.u32 4294901760, %v850_v41  ;;  %s346_s30 = scalar_lea.vmem %s7774_s2, %s7070_s15  ;;  %s6976_s12 = smov 104  }
  0x23   : > { %v363_v10 = vsel %vm361_vm1, %v354_v8, 0  ;;  %6353 = vmatpush3.msra.mxu0 %v7087_v5  ;;  %v471_v16 = vand.u32 4294901760, %v470_v11  ;;  %v478_v18 = vand.u32 4294901760, %v7102_v13  ;;  %v485_v19 = vand.u32 4294901760, %v7105_v14  ;;  %v355_v32 = vld [vmem:[%s342_s9] sm:$0xff]  ;;  %s6977_s13 = smov 16   ;;  %s353_s19 = scalar_lea.vmem %s7779_s7, %s7070_s15 }
  0x24   : > { %v7099_v12 = vand.u32 4294901760, %v363_v10  ;;  %6354 = vmatprep.subr.mxu0 %v6972_v0  ;;  %v492_v20 = vand.u32 4294901760, %v7109_v15  ;;  %v855_v34 = vsel %vm361_vm1, %v355_v32, 0  ;;  %v7190_v44 = vsub.f32 %v852_v36, %v7168_v39  ;;  %s6978_s14 = smov 8   ;;  %s6979_s16 = smov 24  }
  0x25   : > { %6355 = vmatpush3.msra.mxu0 %v7089_v6  ;;  %v472_v21 = vsub.f32 %v470_v11, %v471_v16  ;;  %v479_v23 = vsub.f32 %v7102_v13, %v478_v18  ;;  %v486_v24 = vsub.f32 %v7105_v14, %v485_v19  ;;  %v7165_v38 = vand.u32 4294901760, %v855_v34 }
  0x26   : > { %v7113_v17 = vsub.f32 %v363_v10, %v7099_v12  ;;  %6356 = vmatprep.subr.mxu0 %v6972_v0  ;;  %v493_v28 = vsub.f32 %v7109_v15, %v492_v20  ;;  %v963_v46 = vand.u32 4294901760, %v7173_v40  ;;  %v7200_v47 = vsub.f32 %v851_v37, %v7179_v42  ;;  %v1342_v10 = vld [vmem:[%s7777_s5] sm:$0xff] }
  0x27   : > { %6357 = vmatpush3.msra.mxu0 %v7094_v9  ;;  %v473_v25 = vand.u32 4294901760, %v472_v21  ;;  %v480_v27 = vand.u32 4294901760, %v479_v23  ;;  %v487_v30 = vand.u32 4294901760, %v486_v24  ;;  %v7184_v43 = vsub.f32 %v855_v34, %v7165_v38 }
  0x28   : > { %v436_v22 = vand.u32 4294901760, %v7113_v17  ;;  %6372 = vmatprep.subr.mxu0 %v6972_v0  ;;  %v494_v31 = vand.u32 4294901760, %v493_v28  ;;  %v7210_v49 = vsub.f32 %v850_v41, %v7192_v45  ;;  %v970_v50 = vand.u32 4294901760, %v7190_v44 }
  0x29   : > { %6362 = vmatpush3.msra.mxu1 %v473_v25  ;;  %v928_v48 = vand.u32 4294901760, %v7184_v43  ;;  %v964_v51 = vsub.f32 %v7173_v40, %v963_v46  ;;  %v977_v52 = vand.u32 4294901760, %v7200_v47  ;;  %v7302_v1 = vand.u32 4294901760, %v1345_v63 }
  0x2a   : > { %v437_v26 = vsub.f32 %v7113_v17, %v436_v22  ;;  %6363 = vmatprep.subr.mxu1 %v6972_v0  ;;  %v971_v54 = vsub.f32 %v7190_v44, %v970_v50  ;;  %v984_v55 = vand.u32 4294901760, %v7210_v49  ;;  %vm5513_vm3 = vcmask 130048  }
  0x2b   : > { %6364 = vmatpush3.msra.mxu1 %v480_v27  ;;  %v929_v53 = vsub.f32 %v7184_v43, %v928_v48  ;;  %v965_v56 = vand.u32 4294901760, %v964_v51  ;;  %v978_v57 = vsub.f32 %v7200_v47, %v977_v52  ;;  %v7306_v2 = vsub.f32 %v1345_v63, %v7302_v1 }
  0x2c   : > { %v438_v29 = vand.u32 4294901760, %v437_v26  ;;  %6365 = vmatprep.subr.mxu1 %v6972_v0  ;;  %v972_v59 = vand.u32 4294901760, %v971_v54  ;;  %v985_v60 = vsub.f32 %v7210_v49, %v984_v55  ;;  %vm5515_vm4 = vcmask 195584  }
  0x2d   : > { %6366 = vmatpush3.msra.mxu1 %v487_v30  ;;  %v930_v58 = vand.u32 4294901760, %v929_v53  ;;  %v979_v61 = vand.u32 4294901760, %v978_v57  ;;  %v1455_v7 = vand.u32 4294901760, %v7306_v2 }
  0x2e   : > { %6359 = vmatmul.mubr.f32.vlgmr.msra.gmra.mxu0 %v438_v29  ;;  %6367 = vmatprep.subr.mxu1 %v6972_v0  ;;  %v986_v62 = vand.u32 4294901760, %v985_v60 }
  0x2f   : > { %6373 = vmatpush3.msra.mxu0 %v470_v11  ;;  %6368 = vmatpush3.msra.mxu1 %v494_v31 }
  0x30   : > { %6374 = vmatprep.subr.mxu0 %v6972_v0  ;;  %6370 = vmatmul.mubr.f32.vlgmr.msra.gmra.mxu1 %v7099_v12 }
  0x31   : > { %6375 = vmatpush3.msra.mxu0 %v7102_v13  ;;  %6383 = vmatprep.subr.mxu1 %v6972_v0 }
  0x32   : > { %6376 = vmatprep.subr.mxu0 %v6972_v0  ;;  %6380 = vmatprep.mubr.msk.f32.mxu0 %vm6973_vm0, %v6972_v0 }
  0x33   : > { %6377 = vmatpush3.msra.mxu0 %v7105_v14  ;;  %6384 = vmatpush3.msra.mxu1 %v7085_v4 }
  0x34   : > { %6378 = vmatprep.subr.mxu0 %v6972_v0  ;;  %6385 = vmatprep.subr.mxu1 %v6972_v0 }
  0x35   : > { %6379 = vmatpush3.msra.mxu0 %v7109_v15  ;;  %6386 = vmatpush3.msra.mxu1 %v7087_v5  ;;  %v7335_v15 = vand.u32 4294901760, %v1342_v10 }
  0x36   : > { %6381 = vmatmul.mubr.f32.vlgmr.msra.gmra.mxu0 %v7113_v17  ;;  %6394 = vmatprep.subr.mxu0 %v6972_v0 }
  0x37   : > { %6395 = vmatpush3.msra.mxu0 %v471_v16  ;;  %6387 = vmatprep.subr.mxu1 %v6972_v0 }
  0x38   : > { %6396 = vmatprep.subr.mxu0 %v6972_v0  ;;  %6388 = vmatpush3.msra.mxu1 %v7089_v6 }
  0x39   : > { %6397 = vmatpush3.msra.mxu0 %v478_v18  ;;  %6389 = vmatprep.subr.mxu1 %v6972_v0 }
  0x3a   : > { %6398 = vmatprep.subr.mxu0 %v6972_v0  ;;  %6390 = vmatpush3.msra.mxu1 %v7094_v9 }
  0x3b   : > { %6391 = vmatprep.mubr.msk.f32.mxu1 %vm6973_vm0, %v6972_v0  ;;  %6399 = vmatpush3.msra.mxu0 %v485_v19 }
  0x3c   : > { %6392 = vmatmul.mubr.f32.vlgmr.msra.gmra.mxu1 %v436_v22  ;;  %6400 = vmatprep.subr.mxu0 %v6972_v0 }
  0x3d   : > { %6405 = vmatprep.subr.mxu1 %v6972_v0  ;;  %6401 = vmatpush3.msra.mxu0 %v492_v20  ;;  %v1475_v20 = vsub.f32 %v1342_v10, %v7335_v15 }
  0x3e   : > { %6402 = vmatprep.mubr.msk.f32.mxu0 %vm6973_vm0, %v6972_v0  ;;  %6406 = vmatpush3.msra.mxu1 %v7085_v4  ;;  %v7312_v4 = vand.u32 4294901760, %v1344_v3 }
  0x3f   : > { %6403 = vmatmul.mubr.f32.vlgmr.msra.gmra.mxu0 %v7099_v12  ;;  %6407 = vmatprep.subr.mxu1 %v6972_v0  ;;  %v1476_v25 = vand.u32 4294901760, %v1475_v20 }
  0x40   : > { %6416 = vmatprep.subr.mxu0 %v6972_v0  ;;  %6408 = vmatpush3.msra.mxu1 %v7087_v5  ;;  %v1343_v5 = vld [vmem:[%s7777_s5 + $0x8] sm:$0xff] }
  0x41   : > { %6417 = vmatpush3.msra.mxu0 %v7153_v35  ;;  %6409 = vmatprep.subr.mxu1 %v6972_v0  ;;  %v7324_v8 = vand.u32 4294901760, %v1343_v5  ;;  %v1477_v28 = vsub.f32 %v1475_v20, %v1476_v25 }
  0x42   : > { %6418 = vmatprep.subr.mxu0 %v6972_v0  ;;  %6410 = vmatpush3.msra.mxu1 %v7089_v6  ;;  %v1461_v6 = vsub.f32 %v1344_v3, %v7312_v4 }
  0x43   : > { %6419 = vmatpush3.msra.mxu0 %v7168_v39  ;;  %6411 = vmatprep.subr.mxu1 %v6972_v0  ;;  %v1468_v13 = vsub.f32 %v1343_v5, %v7324_v8  ;;  %v1478_v30 = vand.u32 4294901760, %v1477_v28 }
  0x44   : > { %6420 = vmatprep.subr.mxu0 %v6972_v0  ;;  %6412 = vmatpush3.msra.mxu1 %v7094_v9  ;;  %v356_v9 = vld [vmem:[%s346_s30] sm:$0xff]  ;;  %v1462_v14 = vand.u32 4294901760, %v1461_v6 }
  0x45   : > { %6413 = vmatprep.mubr.msk.f32.mxu1 %vm6973_vm0, %v6972_v0  ;;  %6421 = vmatpush3.msra.mxu0 %v7179_v42  ;;  %v1347_v11 = vsel %vm361_vm1, %v356_v9, 0  ;;  %v1469_v19 = vand.u32 4294901760, %v1468_v13 }
  0x46   : > { %6414 = vmatmul.mubr.f32.vlgmr.msra.gmra.mxu1 %v7099_v12  ;;  %6422 = vmatprep.subr.mxu0 %v6972_v0  ;;  %v1456_v12 = vsub.f32 %v7306_v2, %v1455_v7  ;;  %v7337_v16 = vand.u32 4294901760, %v1347_v11  ;;  %v1463_v18 = vsub.f32 %v1461_v6, %v1462_v14 }
  0x47   : > { %6427 = vmatprep.subr.mxu1 %v6972_v0  ;;  %6423 = vmatpush3.msra.mxu0 %v7192_v45  ;;  %v1470_v23 = vsub.f32 %v1468_v13, %v1469_v19 }
  0x48   : > { %6428 = vmatpush3.msra.mxu1 %v965_v56  ;;  %6424 = vmatprep.mubr.msk.f32.mxu0 %vm6973_vm0, %v6972_v0  ;;  %v1457_v17 = vand.u32 4294901760, %v1456_v12  ;;  %v1419_v21 = vsub.f32 %v1347_v11, %v7337_v16  ;;  %v1464_v22 = vand.u32 4294901760, %v1463_v18 }
  0x49   : > { %6429 = vmatprep.subr.mxu1 %v6972_v0  ;;  %6438 = vmatprep.subr.mxu0 %v6972_v0  ;;  %v1471_v26 = vand.u32 4294901760, %v1470_v23 }
  0x4a   : > { %6425 = vmatmul.mubr.f32.vlgmr.msra.gmra.mxu0 %v930_v58  ;;  %6430 = vmatpush3.msra.mxu1 %v972_v59  ;;  %v1420_v24 = vand.u32 4294901760, %v1419_v21 }
  0x4b   : > { %6439 = vmatpush3.msra.mxu0 %v7173_v40  ;;  %6431 = vmatprep.subr.mxu1 %v6972_v0 }
  0x4c   : > { %6440 = vmatprep.subr.mxu0 %v6972_v0  ;;  %6432 = vmatpush3.msra.mxu1 %v979_v61  ;;  %v1421_v27 = vsub.f32 %v1419_v21, %v1420_v24 }
  0x4d   : > { %6441 = vmatpush3.msra.mxu0 %v7190_v44  ;;  %6433 = vmatprep.subr.mxu1 %v6972_v0 }
  0x4e   : > { %6442 = vmatprep.subr.mxu0 %v6972_v0  ;;  %6434 = vmatpush3.msra.mxu1 %v986_v62  ;;  %v1422_v29 = vand.u32 4294901760, %v1421_v27 }
  0x4f   : > { %6435 = vmatprep.mubr.msk.f32.mxu1 %vm6973_vm0, %v6972_v0  ;;  %6443 = vmatpush3.msra.mxu0 %v7200_v47 }
  0x50   : > { %6436 = vmatmul.mubr.f32.vlgmr.msra.gmra.mxu1 %v7165_v38  ;;  %6444 = vmatprep.subr.mxu0 %v6972_v0 }
  0x51   : > { %6449 = vmatprep.subr.mxu1 %v6972_v0  ;;  %6445 = vmatpush3.msra.mxu0 %v7210_v49 }
  0x52   : > { %6446 = vmatprep.mubr.msk.f32.mxu0 %vm6973_vm0, %v6972_v0  ;;  %6450 = vmatpush3.msra.mxu1 %v7153_v35 }
  0x53   : > { %6447 = vmatmul.mubr.f32.vlgmr.msra.gmra.mxu0 %v7184_v43  ;;  %6451 = vmatprep.subr.mxu1 %v6972_v0 }
  0x54   : > { %6460 = vmatprep.subr.mxu0 %v6972_v0  ;;  %6452 = vmatpush3.msra.mxu1 %v7168_v39 }
  0x55   : > { %6461 = vmatpush3.msra.mxu0 %v963_v46  ;;  %6453 = vmatprep.subr.mxu1 %v6972_v0 }
  0x56   : > { %6462 = vmatprep.subr.mxu0 %v6972_v0  ;;  %6454 = vmatpush3.msra.mxu1 %v7179_v42 }
  0x57   : > { %6463 = vmatpush3.msra.mxu0 %v970_v50  ;;  %6455 = vmatprep.subr.mxu1 %v6972_v0 }
  0x58   : > { %6464 = vmatprep.subr.mxu0 %v6972_v0  ;;  %6456 = vmatpush3.msra.mxu1 %v7192_v45 }
  0x59   : > { %6457 = vmatprep.mubr.msk.f32.mxu1 %vm6973_vm0, %v6972_v0  ;;  %6465 = vmatpush3.msra.mxu0 %v977_v52 }
  0x5a   : > { %6458 = vmatmul.mubr.f32.vlgmr.msra.gmra.mxu1 %v928_v48  ;;  %6466 = vmatprep.subr.mxu0 %v6972_v0 }
  0x5b   : > { %6471 = vmatprep.subr.mxu1 %v6972_v0  ;;  %6467 = vmatpush3.msra.mxu0 %v984_v55 }
  0x5c   : > { %6468 = vmatprep.mubr.msk.f32.mxu0 %vm6973_vm0, %v6972_v0  ;;  %6472 = vmatpush3.msra.mxu1 %v7153_v35 }
  0x5d   : > { %6469 = vmatmul.mubr.f32.vlgmr.msra.gmra.mxu0 %v7165_v38  ;;  %6473 = vmatprep.subr.mxu1 %v6972_v0 }
  0x5e   : > { %6479 = vmatprep.mubr.msk.f32.mxu1 %vm6973_vm0, %v6972_v0  ;;  %6474 = vmatpush3.msra.mxu1 %v7168_v39 }
  0x5f   : > { %6482 = vmatprep.subr.mxu0 %v6972_v0  ;;  %6475 = vmatprep.subr.mxu1 %v6972_v0 }
  0x60   : > { %6490 = vmatprep.mubr.msk.f32.mxu0 %vm6973_vm0, %v6972_v0  ;;  %6476 = vmatpush3.msra.mxu1 %v7179_v42 }
  0x61   : > { %6477 = vmatprep.subr.mxu1 %v6972_v0  ;;  %6483 = vmatpush3.msra.mxu0 %v7302_v1 }
  0x62   : > { %6478 = vmatpush3.msra.mxu1 %v7192_v45  ;;  %6484 = vmatprep.subr.mxu0 %v6972_v0 }
  0x63   : > { %6480 = vmatmul.mubr.f32.vlgmr.msra.gmra.mxu1 %v7165_v38  ;;  %6493 = vmatprep.subr.mxu1 %v6972_v0 }
  0x64   : > { %6501 = vmatprep.mubr.msk.f32.mxu1 %vm6973_vm0, %v6972_v0  ;;  %6485 = vmatpush3.msra.mxu0 %v7312_v4 }
  0x65   : > { %6486 = vmatprep.subr.mxu0 %v6972_v0  ;;  %6494 = vmatpush3.msra.mxu1 %v1457_v17 }
  0x66   : > { %6487 = vmatpush3.msra.mxu0 %v7324_v8  ;;  %6495 = vmatprep.subr.mxu1 %v6972_v0 }
  0x67   : > { %6488 = vmatprep.subr.mxu0 %v6972_v0  ;;  %6496 = vmatpush3.msra.mxu1 %v1464_v22 }
  0x68   : > { %6489 = vmatpush3.msra.mxu0 %v7335_v15  ;;  %6497 = vmatprep.subr.mxu1 %v6972_v0 }
  0x69   : > { %6504 = vmatprep.subr.mxu0 %v6972_v0  ;;  %6498 = vmatpush3.msra.mxu1 %v1471_v26 }
  0x6a   : > { %6499 = vmatprep.subr.mxu1 %v6972_v0  ;;  %6491 = vmatmul.mubr.f32.vlgmr.msra.gmra.mxu0 %v1422_v29 }
  0x6b   : > { %6500 = vmatpush3.msra.mxu1 %v1478_v30  ;;  %6505 = vmatpush3.msra.mxu0 %v7306_v2 }
  0x6c   : > { %6515 = vmatprep.subr.mxu1 %v6972_v0  ;;  %6506 = vmatprep.subr.mxu0 %v6972_v0 }
  0x6d   : > { %6502 = vmatmul.mubr.f32.vlgmr.msra.gmra.mxu1 %v7337_v16  ;;  %6507 = vmatpush3.msra.mxu0 %v1461_v6 }
  0x6e   : > { %6516 = vmatpush3.msra.mxu1 %v7302_v1  ;;  %6508 = vmatprep.subr.mxu0 %v6972_v0 }
  0x6f   : > { %6517 = vmatprep.subr.mxu1 %v6972_v0  ;;  %6509 = vmatpush3.msra.mxu0 %v1468_v13 }
  0x70   : > { %6518 = vmatpush3.msra.mxu1 %v7312_v4  ;;  %6510 = vmatprep.subr.mxu0 %v6972_v0 }
  0x71   : > { %6519 = vmatprep.subr.mxu1 %v6972_v0  ;;  %6511 = vmatpush3.msra.mxu0 %v1475_v20 }
  0x72   : > { %6520 = vmatpush3.msra.mxu1 %v7324_v8  ;;  %6512 = vmatprep.mubr.msk.f32.mxu0 %vm6973_vm0, %v6972_v0 }
  0x73   : > { %6521 = vmatprep.subr.mxu1 %v6972_v0  ;;  %6526 = vmatprep.subr.mxu0 %v6972_v0 }
  0x74   : > { %6513 = vmatmul.mubr.f32.vlgmr.msra.gmra.mxu0 %v1419_v21  ;;  %6522 = vmatpush3.msra.mxu1 %v7335_v15 }
  0x75   : > { %6527 = vmatpush3.msra.mxu0 %v1455_v7  ;;  %6523 = vmatprep.mubr.msk.f32.mxu1 %vm6973_vm0, %v6972_v0 }
  0x76   : > { %6528 = vmatprep.subr.mxu0 %v6972_v0  ;;  %6537 = vmatprep.subr.mxu1 %v6972_v0 }
  0x77   : > { %6524 = vmatmul.mubr.f32.vlgmr.msra.gmra.mxu1 %v1420_v24  ;;  %6529 = vmatpush3.msra.mxu0 %v1462_v14 }
  0x78   : > { %6538 = vmatpush3.msra.mxu1 %v7302_v1  ;;  %6530 = vmatprep.subr.mxu0 %v6972_v0 }
  0x79   : > { %6539 = vmatprep.subr.mxu1 %v6972_v0  ;;  %6531 = vmatpush3.msra.mxu0 %v1469_v19 }
  0x7a   : > { %6540 = vmatpush3.msra.mxu1 %v7312_v4  ;;  %6532 = vmatprep.subr.mxu0 %v6972_v0 }
  0x7b   : > { %6541 = vmatprep.subr.mxu1 %v6972_v0  ;;  %6533 = vmatpush3.msra.mxu0 %v1476_v25 }
  0x7c   : > { %6534 = vmatprep.mubr.msk.f32.mxu0 %vm6973_vm0, %v6972_v0  ;;  %6542 = vmatpush3.msra.mxu1 %v7324_v8 }
  0x7d   : > { %6535 = vmatmul.mubr.f32.vlgmr.msra.gmra.mxu0 %v7337_v16  ;;  %6543 = vmatprep.subr.mxu1 %v6972_v0 }
  0x7e   : > { %6545 = vmatprep.mubr.msk.f32.mxu1 %vm6973_vm0, %v6972_v0  ;;  %6544 = vmatpush3.msra.mxu1 %v7335_v15 }
  0x7f   : > { %6548 = vmatprep.subr.mxu0 %v6972_v0  ;;  %6546 = vmatmul.mubr.f32.vlgmr.msra.gmra.mxu1 %v7337_v16 }
  0x80   : > { %6550 = vmatprep.mubr.msk.f32.mxu0 %vm6973_vm0, %v6972_v0  ;;  %6553 = vmatprep.subr.mxu1 %v6972_v0 }
  0x81   : > { %6555 = vmatprep.mubr.msk.f32.mxu1 %vm6973_vm0, %v6972_v0 }
  0xee   : > { %v440_v31 = vpop.f32.mrf.mxu0 }
  0xf0   : > { %v6360_v32 = vpop.f32.mrf.mxu0  ;;  %v531_v33 = vpop.f32.mrf.mxu1 }
  0xf1   : > { %v532_v37 = vadd.f32 %v531_v33, %v440_v31 }
  0xf2   : > { %v6371_v34 = vpop.f32.mrf.mxu1 }
  0xf6   : > { %v611_v35 = vpop.f32.mrf.mxu0 }
  0xf7   : > { %v612_v40 = vadd.f32 %v611_v35, %v532_v37 }
  0xf8   : > { %v6382_v36 = vpop.f32.mrf.mxu0 }
  0xfc   : > { %v688_v38 = vpop.f32.mrf.mxu1 }
  0xfd   : > { %v689_v42 = vadd.f32 %v688_v38, %v612_v40 }
  0xfe   : > { %v6393_v39 = vpop.f32.mrf.mxu1 }
  0xff   : > { %v771_v41 = vpop.f32.mrf.mxu0 }
 0x100   : > { %v772_v44 = vadd.f32 %v771_v41, %v689_v42 }
 0x101   : > { %v6404_v43 = vpop.f32.mrf.mxu0 }
 0x106   : > { %v846_v45 = vpop.f32.mrf.mxu1 }
 0x107   : > { %v847_v46 = vadd.f32 %v846_v45, %v772_v44 }
 0x108   : > { %v6415_v47 = vpop.f32.mrf.mxu1 }
 0x109   : > { %v7387_v48 = vmul.f32 0.35355338, %v847_v46 }
 0x10a   : > { %v932_v49 = vpop.f32.mrf.mxu0 }
 0x10b   : > { %2748 = vrot.lane.b32.xlu1 %v7387_v48, %s6974_s10  ;;  %v1837_v55 = vsel %vm1835_vm2, %v7387_v48, 0 }
 0x10c   : > { %v6426_v50 = vpop.f32.mrf.mxu0  ;;  %v1908_v58 = vand.u32 4294901760, %v1837_v55 }
 0x10e   : > { %v1909_v62 = vsub.f32 %v1837_v55, %v1908_v58 }
 0x110   : > { %v1023_v51 = vpop.f32.mrf.mxu1  ;;  %v1910_v3 = vand.u32 4294901760, %v1909_v62 }
 0x111   : > { %v1024_v56 = vadd.f32 %v1023_v51, %v932_v49 }
 0x112   : > { %v6437_v52 = vpop.f32.mrf.mxu1  ;;  %v1911_v8 = vsub.f32 %v1909_v62, %v1910_v3 }
 0x113   : > { %v1103_v53 = vpop.f32.mrf.mxu0 }
 0x114   : > { %v1104_v60 = vadd.f32 %v1103_v53, %v1024_v56  ;;  %v1912_v11 = vand.u32 4294901760, %v1911_v8 }
 0x115   : > { %v6448_v54 = vpop.f32.mrf.mxu0 }
 0x11a   : > { %v1180_v57 = vpop.f32.mrf.mxu1 }
 0x11b   : > { %v1181_v63 = vadd.f32 %v1180_v57, %v1104_v60 }
 0x11c   : > { %v6459_v59 = vpop.f32.mrf.mxu1 }
 0x11d   : > { %v1263_v61 = vpop.f32.mrf.mxu0 }
 0x11e   : > { %v1264_v2 = vadd.f32 %v1263_v61, %v1181_v63 }
 0x11f   : > { %v6470_v1 = vpop.f32.mrf.mxu0 }
 0x123   : > { %v1338_v4 = vpop.f32.mrf.mxu1 }
 0x124   : > { %v7393_v5 = vadd.f32 %v1338_v4, %v1264_v2 }
 0x125   : > { %v6481_v6 = vpop.f32.mrf.mxu1 }
 0x126   : > { %v1840_v7 = vsel %vm1835_vm2, %v7393_v5, 0 }
 0x127   : > { %v1873_v9 = vand.u32 4294901760, %v1840_v7 }
 0x129   : > { %6549 = vmatpush3.xpose.msra.mxu0 %v1873_v9  ;;  %v1950_v10 = vsub.f32 %v1840_v7, %v1873_v9 }
 0x12a   : > { %6558 = vmatprep.subr.mxu0 %v6972_v0  ;;  %v1424_v15 = vpop.f32.mrf.mxu0 }
 0x12b   : > { %v1951_v12 = vand.u32 4294901760, %v1950_v10 }
 0x12c   : > { %6551 = vmatmul.mubr.f32.vlgmr.msra.gmra.mxu0 %v1912_v11  ;;  %v6492_v16 = vpop.f32.mrf.mxu0 }
 0x12d   : > { %6559 = vmatpush3.xpose.msra.mxu0 %v1950_v10  ;;  %6560 = vmatprep.mubr.msk.f32.mxu0 %vm6973_vm0, %v6972_v0  ;;  %v1952_v13 = vsub.f32 %v1950_v10, %v1951_v12  ;;  %v1515_v17 = vpop.f32.mrf.mxu1 }
 0x12e   : > { %6568 = vmatprep.subr.mxu0 %v6972_v0  ;;  %v1516_v19 = vadd.f32 %v1515_v17, %v1424_v15 }
 0x12f   : > { %v1953_v14 = vand.u32 4294901760, %v1952_v13  ;;  %v6503_v18 = vpop.f32.mrf.mxu1 }
 0x130   : > { %6561 = vmatmul.mubr.f32.vlgmr.msra.gmra.mxu0 %v1909_v62 }
 0x131   : > { %6554 = vmatpush3.xpose.msra.mxu1 %v1953_v14  ;;  %6569 = vmatpush3.xpose.msra.mxu0 %v1951_v12 }
 0x132   : > { %6570 = vmatprep.mubr.msk.f32.mxu0 %vm6973_vm0, %v6972_v0  ;;  %6563 = vmatprep.subr.mxu1 %v6972_v0 }
 0x133   : > { %6578 = vmatprep.subr.mxu0 %v6972_v0 }
 0x134   : > { %6556 = vmatmul.mubr.f32.vlgmr.msra.gmra.mxu1 %v1908_v58  ;;  %6571 = vmatmul.mubr.f32.vlgmr.msra.gmra.mxu0 %v1908_v58  ;;  %v1595_v20 = vpop.f32.mrf.mxu0 }
 0x135   : > { %6564 = vmatpush3.xpose.msra.mxu1 %v1873_v9  ;;  %6565 = vmatprep.mubr.msk.f32.mxu1 %vm6973_vm0, %v6972_v0  ;;  %v1596_v21 = vadd.f32 %v1595_v20, %v1516_v19 }
 0x136   : > { %6573 = vmatprep.subr.mxu1 %v6972_v0  ;;  %6580 = vmatprep.mubr.msk.f32.mxu0 %vm6973_vm0, %v6972_v0  ;;  %v6514_v22 = vpop.f32.mrf.mxu0 }
 0x137   : > { %v1672_v23 = vpop.f32.mrf.mxu1 }
 0x138   : > { %6566 = vmatmul.mubr.f32.vlgmr.msra.gmra.mxu1 %v1910_v3  ;;  %v1673_v25 = vadd.f32 %v1672_v23, %v1596_v21 }
 0x139   : > { %6574 = vmatpush3.xpose.msra.mxu1 %v1873_v9  ;;  %6575 = vmatprep.mubr.msk.f32.mxu1 %vm6973_vm0, %v6972_v0  ;;  %v6525_v24 = vpop.f32.mrf.mxu1 }
 0x13a   : > { %6583 = vmatprep.subr.mxu1 %v6972_v0 }
 0x13c   : > { %6576 = vmatmul.mubr.f32.vlgmr.msra.gmra.mxu1 %v1908_v58 }
 0x13d   : > { %6585 = vmatprep.mubr.msk.f32.mxu1 %vm6973_vm0, %v6972_v0  ;;  %v1755_v26 = vpop.f32.mrf.mxu0 }
 0x13e   : > { %v1756_v27 = vadd.f32 %v1755_v26, %v1673_v25 }
 0x13f   : > { %v6536_v28 = vpop.f32.mrf.mxu0  ;;  %v1830_v29 = vpop.f32.mrf.mxu1 }
 0x140   : > { %v7415_v30 = vadd.f32 %v1830_v29, %v1756_v27 }
 0x141   : > { %v6547_v31 = vpop.f32.mrf.mxu1 }
 0x142   : > { %v2331_v32 = vand.u32 4294901760, %v7415_v30 }
 0x144   : > { %6579 = vmatpush3.msra.mxu0 %v2331_v32  ;;  %v7419_v33 = vsub.f32 %v7415_v30, %v2331_v32 }
 0x145   : > { %6588 = vmatprep.subr.mxu0 %v6972_v0 }
 0x146   : > { %v2409_v34 = vand.u32 4294901760, %v7419_v33 }
 0x148   : > { %v2410_v35 = vsub.f32 %v7419_v33, %v2409_v34 }
 0x14a   : > { %v2411_v36 = vand.u32 4294901760, %v2410_v35 }
 0x14c   : > { %6584 = vmatpush3.msra.mxu1 %v2411_v36 }
 0x14d   : > { %6593 = vmatprep.subr.mxu1 %v6972_v0 }
 0x17d   : > { %v2749_v1 = vpop.permute.xlu1 %2748 }
 0x17e   : > { %v2752_v4 = vsel %vm1835_vm2, %v2749_v1, 0 }
 0x17f   : > { %v2822_v9 = vand.u32 4294901760, %v2752_v4 }
 0x181   : > { %v2823_v14 = vsub.f32 %v2752_v4, %v2822_v9 }
 0x183   : > { %v2824_v18 = vand.u32 4294901760, %v2823_v14 }
 0x185   : > { %v2825_v20 = vsub.f32 %v2823_v14, %v2824_v18 }
 0x187   : > { %v2826_v22 = vand.u32 4294901760, %v2825_v20 }
 0x1ec   : > { %v1914_v37 = vpop.f32.mrf.mxu0 }
 0x1ee   : > { %v6552_v38 = vpop.f32.mrf.mxu0 }
 0x1f0   : > { %v2064_v39 = vpop.f32.mrf.mxu0 }
 0x1f2   : > { %v6562_v40 = vpop.f32.mrf.mxu0 }
 0x1f4   : > { %v1990_v41 = vpop.f32.mrf.mxu1  ;;  %v2212_v42 = vpop.f32.mrf.mxu0 }
 0x1f5   : > { %v1991_v43 = vadd.f32 %v1990_v41, %v1914_v37 }
 0x1f6   : > { %v6557_v44 = vpop.f32.mrf.mxu1  ;;  %v6572_v45 = vpop.f32.mrf.mxu0 }
 0x1f7   : > { %v2065_v46 = vadd.f32 %v2064_v39, %v1991_v43 }
 0x1f8   : > { %v2138_v47 = vpop.f32.mrf.mxu1 }
 0x1f9   : > { %v2139_v49 = vadd.f32 %v2138_v47, %v2065_v46 }
 0x1fa   : > { %v6567_v50 = vpop.f32.mrf.mxu1 }
 0x1fb   : > { %v2213_v51 = vadd.f32 %v2212_v42, %v2139_v49 }
 0x1fc   : > { %v2284_v52 = vpop.f32.mrf.mxu1 }
 0x1fd   : > { %v2285_v53 = vadd.f32 %v2284_v52, %v2213_v51 }
 0x1fe   : > { %v6577_v54 = vpop.f32.mrf.mxu1 }
 0x1ff   : > { %v2288_v55 = vsel %vm1835_vm2, %v2285_v53, -inf }
 0x200   : > { %2289 = vmax.xlane.f32.xlu0 %v2288_v55 }
 0x216   : > { %2750 = vrot.lane.b32.xlu0 %v7393_v5, %s6974_s10 }
 0x21a   : > { %3212 = vrot.lane.b32.xlu0 %v7415_v30, %s6974_s10 }
 0x21e   : > { %3668 = vrot.lane.b32.xlu0 %v7393_v5, %s6975_s11 }
 0x222   : > { %3666 = vrot.lane.b32.xlu0 %v7387_v48, %s6975_s11 }
 0x289   : > { %v2290_v56 = vpop.xlane.xlu0 %2289 }
 0x28a   : > { %v2291_v57 = vsub.f32 %v2285_v53, %v2290_v56 }
 0x28c   : > { %v2292_v58 = vmul.f32 1.442695, %v2291_v57 }
 0x28d   : > { %v2751_v59 = vpop.permute.xlu0 %2750 }
 0x28e   : > { %6899 = vpow2.f32 %v2292_v58  ;;  %v2754_v60 = vsel %vm1835_vm2, %v2751_v59, 0 }
 0x28f   : > { %v2787_v61 = vand.u32 4294901760, %v2754_v60 }
 0x291   : > { %v7437_v62 = vsub.f32 %v2754_v60, %v2787_v61  ;;  %v3213_v7 = vpop.permute.xlu0 %3212 }
 0x292   : > { %v7449_v12 = vand.u32 4294901760, %v3213_v7 }
 0x293   : > { %v2865_v6 = vand.u32 4294901760, %v7437_v62 }
 0x294   : > { %v7455_v17 = vsub.f32 %v3213_v7, %v7449_v12 }
 0x295   : > { %v2866_v11 = vsub.f32 %v7437_v62, %v2865_v6 }
 0x296   : > { %v3327_v19 = vand.u32 4294901760, %v7455_v17 }
 0x297   : > { %v2867_v16 = vand.u32 4294901760, %v2866_v11 }
 0x298   : > { %v3328_v21 = vsub.f32 %v7455_v17, %v3327_v19 }
 0x29a   : > { %v3329_v23 = vand.u32 4294901760, %v3328_v21 }
 0x29b   : > { %v7439_v63 = vpop.eup %6899 }
 0x29c   : > { %v2298_v2 = vsel %vm1835_vm2, %v7439_v63, 0 }
 0x29d   : > { %v2366_v3 = vand.u32 4294901760, %v2298_v2 }
 0x29f   : > { %v2367_v8 = vsub.f32 %v2298_v2, %v2366_v3  ;;  %6586 = vmatmul.mubr.f32.vlgmr.msra.gmra.mxu1 %v2366_v3  ;;  %v3669_v2 = vpop.permute.xlu0 %3668 }
 0x2a0   : > { %6594 = vmatpush3.msra.mxu1 %v2331_v32  ;;  %6595 = vmatprep.mubr.msk.f32.mxu1 %vm6973_vm0, %v6972_v0 }
 0x2a1   : > { %6603 = vmatprep.subr.mxu1 %v6972_v0  ;;  %v2368_v10 = vand.u32 4294901760, %v2367_v8 }
 0x2a3   : > { %6596 = vmatmul.mubr.f32.vlgmr.msra.gmra.mxu1 %v2368_v10  ;;  %v2369_v13 = vsub.f32 %v2367_v8, %v2368_v10 }
 0x2a4   : > { %6604 = vmatpush3.msra.mxu1 %v2331_v32  ;;  %6605 = vmatprep.mubr.msk.f32.mxu1 %vm6973_vm0, %v6972_v0 }
 0x2a5   : > { %6613 = vmatprep.subr.mxu1 %v6972_v0  ;;  %v2370_v15 = vand.u32 4294901760, %v2369_v13 }
 0x2a7   : > { %6581 = vmatmul.mubr.f32.vlgmr.msra.gmra.mxu0 %v2370_v15  ;;  %6606 = vmatmul.mubr.f32.vlgmr.msra.gmra.mxu1 %v2366_v3 }
 0x2a8   : > { %6589 = vmatpush3.msra.mxu0 %v7419_v33  ;;  %6614 = vmatpush3.xpose.msra.mxu1 %v2867_v16 }
 0x2a9   : > { %6590 = vmatprep.mubr.msk.f32.mxu0 %vm6973_vm0, %v6972_v0  ;;  %6598 = vmatprep.subr.mxu0 %v6972_v0 }
 0x2aa   : > { %6615 = vmatprep.mubr.msk.f32.mxu1 %vm6973_vm0, %v6972_v0  ;;  %6623 = vmatprep.subr.mxu1 %v6972_v0 }
 0x2ab   : > { %6591 = vmatmul.mubr.f32.vlgmr.msra.gmra.mxu0 %v2367_v8  ;;  %6616 = vmatmul.mubr.f32.vlgmr.msra.gmra.mxu1 %v2822_v9  ;;  %v3667_v8 = vpop.permute.xlu0 %3666 }
 0x2ac   : > { %6599 = vmatpush3.msra.mxu0 %v2409_v34  ;;  %6624 = vmatpush3.xpose.msra.mxu1 %v2787_v61 }
 0x2ad   : > { %6600 = vmatprep.mubr.msk.f32.mxu0 %vm6973_vm0, %v6972_v0  ;;  %6608 = vmatprep.subr.mxu0 %v6972_v0 }
 0x2ae   : > { %6625 = vmatprep.mubr.msk.f32.mxu1 %vm6973_vm0, %v6972_v0  ;;  %6633 = vmatprep.subr.mxu1 %v6972_v0 }
 0x2af   : > { %6601 = vmatmul.mubr.f32.vlgmr.msra.gmra.mxu0 %v2366_v3  ;;  %6626 = vmatmul.mubr.f32.vlgmr.msra.gmra.mxu1 %v2824_v18  ;;  %v3672_v3 = vsel %vm1835_vm2, %v3669_v2, 0 }
 0x2b0   : > { %6609 = vmatpush3.xpose.msra.mxu0 %v2787_v61  ;;  %6634 = vmatpush3.xpose.msra.mxu1 %v2787_v61  ;;  %v3705_v4 = vand.u32 4294901760, %v3672_v3 }
 0x2b1   : > { %6610 = vmatprep.mubr.msk.f32.mxu0 %vm6973_vm0, %v6972_v0  ;;  %6618 = vmatprep.subr.mxu0 %v6972_v0 }
 0x2b2   : > { %6635 = vmatprep.mubr.msk.f32.mxu1 %vm6973_vm0, %v6972_v0  ;;  %6643 = vmatprep.subr.mxu1 %v6972_v0 }
 0x2b3   : > { %6611 = vmatmul.mubr.f32.vlgmr.msra.gmra.mxu0 %v2826_v22  ;;  %6636 = vmatmul.mubr.f32.vlgmr.msra.gmra.mxu1 %v2822_v9 }
 0x2b4   : > { %6619 = vmatpush3.xpose.msra.mxu0 %v7437_v62  ;;  %6644 = vmatpush3.msra.mxu1 %v3329_v23 }
 0x2b5   : > { %6620 = vmatprep.mubr.msk.f32.mxu0 %vm6973_vm0, %v6972_v0  ;;  %6628 = vmatprep.subr.mxu0 %v6972_v0 }
 0x2b6   : > { %6645 = vmatprep.mubr.msk.f32.mxu1 %vm6973_vm0, %v6972_v0  ;;  %6653 = vmatprep.subr.mxu1 %v6972_v0 }
 0x2b7   : > { %6621 = vmatmul.mubr.f32.vlgmr.msra.gmra.mxu0 %v2823_v14 }
 0x2b8   : > { %6629 = vmatpush3.xpose.msra.mxu0 %v2865_v6  ;;  %6630 = vmatprep.mubr.msk.f32.mxu0 %vm6973_vm0, %v6972_v0  ;;  %v7506_v6 = vsub.f32 %v3672_v3, %v3705_v4 }
 0x2b9   : > { %6638 = vmatprep.subr.mxu0 %v6972_v0 }
 0x2ba   : > { %v3783_v10 = vand.u32 4294901760, %v7506_v6 }
 0x2bb   : > { %6631 = vmatmul.mubr.f32.vlgmr.msra.gmra.mxu0 %v2822_v9 }
 0x2bc   : > { %6639 = vmatpush3.msra.mxu0 %v7449_v12  ;;  %6640 = vmatprep.mubr.msk.f32.mxu0 %vm6973_vm0, %v6972_v0  ;;  %v3784_v16 = vsub.f32 %v7506_v6, %v3783_v10 }
 0x2bd   : > { %6648 = vmatprep.subr.mxu0 %v6972_v0 }
 0x2be   : > { %v3785_v23 = vand.u32 4294901760, %v3784_v16 }
 0x35f   : > { %v2448_v24 = vpop.f32.mrf.mxu1 }
 0x361   : > { %v6587_v25 = vpop.f32.mrf.mxu1 }
 0x363   : > { %v2596_v26 = vpop.f32.mrf.mxu1 }
 0x365   : > { %v6597_v27 = vpop.f32.mrf.mxu1 }
 0x367   : > { %v2372_v28 = vpop.f32.mrf.mxu0  ;;  %v2742_v29 = vpop.f32.mrf.mxu1 }
 0x368   : > { %v2449_v31 = vadd.f32 %v2448_v24, %v2372_v28 }
 0x369   : > { %v6582_v32 = vpop.f32.mrf.mxu0  ;;  %v6607_v33 = vpop.f32.mrf.mxu1 }
 0x36b   : > { %v2522_v34 = vpop.f32.mrf.mxu0  ;;  %v2904_v35 = vpop.f32.mrf.mxu1 }
 0x36c   : > { %v2523_v36 = vadd.f32 %v2522_v34, %v2449_v31 }
 0x36d   : > { %v6592_v37 = vpop.f32.mrf.mxu0  ;;  %v6617_v38 = vpop.f32.mrf.mxu1 }
 0x36e   : > { %v2597_v39 = vadd.f32 %v2596_v26, %v2523_v36 }
 0x36f   : > { %v2670_v40 = vpop.f32.mrf.mxu0  ;;  %v3052_v41 = vpop.f32.mrf.mxu1 }
 0x370   : > { %v2671_v42 = vadd.f32 %v2670_v40, %v2597_v39 }
 0x371   : > { %v6602_v43 = vpop.f32.mrf.mxu0  ;;  %v6627_v44 = vpop.f32.mrf.mxu1 }
 0x372   : > { %v7496_v45 = vadd.f32 %v2742_v29, %v2671_v42 }
 0x373   : > { %v2828_v46 = vpop.f32.mrf.mxu0  ;;  %v3198_v47 = vpop.f32.mrf.mxu1 }
 0x374   : > { %v2905_v51 = vadd.f32 %v2904_v35, %v2828_v46 }
 0x375   : > { %v6612_v49 = vpop.f32.mrf.mxu0  ;;  %v6637_v50 = vpop.f32.mrf.mxu1 }
 0x377   : > { %v2978_v52 = vpop.f32.mrf.mxu0 }
 0x378   : > { %v2979_v53 = vadd.f32 %v2978_v52, %v2905_v51 }
 0x379   : > { %v6622_v54 = vpop.f32.mrf.mxu0 }
 0x37a   : > { %v3053_v55 = vadd.f32 %v3052_v41, %v2979_v53 }
 0x37b   : > { %v3126_v56 = vpop.f32.mrf.mxu0 }
 0x37c   : > { %v3127_v57 = vadd.f32 %v3126_v56, %v3053_v55 }
 0x37d   : > { %v6632_v58 = vpop.f32.mrf.mxu0 }
 0x37e   : > { %v3199_v59 = vadd.f32 %v3198_v47, %v3127_v57 }
 0x380   : > { %v3202_v60 = vsel %vm1835_vm2, %v3199_v59, -inf }
 0x381   : > { %3203 = vmax.xlane.f32.xlu1 %v3202_v60 }
 0x392   : > { %4129 = vrot.lane.b32.xlu1 %v7415_v30, %s6975_s11 }
 0x396   : > { %4585 = vrot.lane.b32.xlu1 %v7393_v5, %s6976_s12 }
 0x39a   : > { %4583 = vrot.lane.b32.xlu1 %v7387_v48, %s6976_s12  ;;  %v3670_v48 = vsel %vm1835_vm2, %v3667_v8, 0 }
 0x39b   : > { %v3740_v14 = vand.u32 4294901760, %v3670_v48 }
 0x39d   : > { %v3741_v21 = vsub.f32 %v3670_v48, %v3740_v14 }
 0x39f   : > { %v3742_v25 = vand.u32 4294901760, %v3741_v21 }
 0x3a1   : > { %v3743_v26 = vsub.f32 %v3741_v21, %v3742_v25 }
 0x40a   : > { %v3204_v61 = vpop.xlane.xlu1 %3203 }
 0x40b   : > { %v3205_v62 = vsub.f32 %v3199_v59, %v3204_v61 }
 0x40d   : > { %v3206_v1 = vmul.f32 1.442695, %v3205_v62 }
 0x40e   : > { %v4130_v11 = vpop.permute.xlu1 %4129 }
 0x40f   : > { %6901 = vpow2.f32 %v3206_v1  ;;  %v7519_v18 = vand.u32 4294901760, %v4130_v11 }
 0x411   : > { %v7526_v24 = vsub.f32 %v4130_v11, %v7519_v18 }
 0x41c   : > { %v7508_v7 = vpop.eup %6901 }
 0x41d   : > { %v3216_v9 = vsel %vm1835_vm2, %v7508_v7, 0 }
 0x41e   : > { %v3284_v5 = vand.u32 4294901760, %v3216_v9 }
 0x420   : > { %v3285_v13 = vsub.f32 %v3216_v9, %v3284_v5  ;;  %6646 = vmatmul.mubr.f32.vlgmr.msra.gmra.mxu1 %v3284_v5 }
 0x421   : > { %6654 = vmatpush3.msra.mxu1 %v7449_v12  ;;  %6655 = vmatprep.mubr.msk.f32.mxu1 %vm6973_vm0, %v6972_v0 }
 0x422   : > { %6663 = vmatprep.subr.mxu1 %v6972_v0  ;;  %v3286_v15 = vand.u32 4294901760, %v3285_v13 }
 0x424   : > { %6656 = vmatmul.mubr.f32.vlgmr.msra.gmra.mxu1 %v3286_v15  ;;  %v3287_v20 = vsub.f32 %v3285_v13, %v3286_v15 }
 0x425   : > { %6664 = vmatpush3.msra.mxu1 %v7449_v12  ;;  %6665 = vmatprep.mubr.msk.f32.mxu1 %vm6973_vm0, %v6972_v0  ;;  %v4244_v12 = vand.u32 4294901760, %v7526_v24 }
 0x426   : > { %6673 = vmatprep.subr.mxu1 %v6972_v0  ;;  %v3288_v22 = vand.u32 4294901760, %v3287_v20 }
 0x427   : > { %v4245_v27 = vsub.f32 %v7526_v24, %v4244_v12 }
 0x428   : > { %6641 = vmatmul.mubr.f32.vlgmr.msra.gmra.mxu0 %v3288_v22  ;;  %6666 = vmatmul.mubr.f32.vlgmr.msra.gmra.mxu1 %v3284_v5 }
 0x429   : > { %6649 = vmatpush3.msra.mxu0 %v7455_v17  ;;  %6674 = vmatpush3.xpose.msra.mxu1 %v3785_v23  ;;  %v3744_v17 = vand.u32 4294901760, %v3743_v26 }
 0x42a   : > { %6650 = vmatprep.mubr.msk.f32.mxu0 %vm6973_vm0, %v6972_v0  ;;  %6658 = vmatprep.subr.mxu0 %v6972_v0 }
 0x42b   : > { %6675 = vmatprep.mubr.msk.f32.mxu1 %vm6973_vm0, %v6972_v0  ;;  %6683 = vmatprep.subr.mxu1 %v6972_v0 }
 0x42c   : > { %6651 = vmatmul.mubr.f32.vlgmr.msra.gmra.mxu0 %v3285_v13  ;;  %6676 = vmatmul.mubr.f32.vlgmr.msra.gmra.mxu1 %v3740_v14 }
 0x42d   : > { %6659 = vmatpush3.msra.mxu0 %v3327_v19  ;;  %6684 = vmatpush3.xpose.msra.mxu1 %v3705_v4  ;;  %v4246_v19 = vand.u32 4294901760, %v4245_v27 }
 0x42e   : > { %6660 = vmatprep.mubr.msk.f32.mxu0 %vm6973_vm0, %v6972_v0  ;;  %6668 = vmatprep.subr.mxu0 %v6972_v0 }
 0x42f   : > { %6685 = vmatprep.mubr.msk.f32.mxu1 %vm6973_vm0, %v6972_v0  ;;  %6693 = vmatprep.subr.mxu1 %v6972_v0 }
 0x430   : > { %6661 = vmatmul.mubr.f32.vlgmr.msra.gmra.mxu0 %v3284_v5  ;;  %6686 = vmatmul.mubr.f32.vlgmr.msra.gmra.mxu1 %v3742_v25  ;;  %v4586_v5 = vpop.permute.xlu1 %4585 }
 0x431   : > { %6669 = vmatpush3.xpose.msra.mxu0 %v3705_v4  ;;  %6694 = vmatpush3.xpose.msra.mxu1 %v3705_v4  ;;  %v3208_v4 = vsel %vm1835_vm2, %v7508_v7, 0.0 }
 0x432   : > { %6670 = vmatprep.mubr.msk.f32.mxu0 %vm6973_vm0, %v6972_v0  ;;  %6678 = vmatprep.subr.mxu0 %v6972_v0 }
 0x433   : > { %6695 = vmatprep.mubr.msk.f32.mxu1 %vm6973_vm0, %v6972_v0  ;;  %6703 = vmatprep.subr.mxu1 %v6972_v0 }
 0x434   : > { %6671 = vmatmul.mubr.f32.vlgmr.msra.gmra.mxu0 %v3744_v17  ;;  %6696 = vmatmul.mubr.f32.vlgmr.msra.gmra.mxu1 %v3740_v14 }
 0x435   : > { %6679 = vmatpush3.xpose.msra.mxu0 %v7506_v6  ;;  %6704 = vmatpush3.msra.mxu1 %v4246_v19 }
 0x436   : > { %6680 = vmatprep.mubr.msk.f32.mxu0 %vm6973_vm0, %v6972_v0  ;;  %6688 = vmatprep.subr.mxu0 %v6972_v0 }
 0x437   : > { %6705 = vmatprep.mubr.msk.f32.mxu1 %vm6973_vm0, %v6972_v0  ;;  %6713 = vmatprep.subr.mxu1 %v6972_v0 }
 0x438   : > { %6681 = vmatmul.mubr.f32.vlgmr.msra.gmra.mxu0 %v3741_v21 }
 0x439   : > { %6689 = vmatpush3.xpose.msra.mxu0 %v3783_v10  ;;  %6690 = vmatprep.mubr.msk.f32.mxu0 %vm6973_vm0, %v6972_v0  ;;  %v4589_v10 = vsel %vm1835_vm2, %v4586_v5, 0 }
 0x43a   : > { %6698 = vmatprep.subr.mxu0 %v6972_v0  ;;  %v4622_v48 = vand.u32 4294901760, %v4589_v10 }
 0x43c   : > { %6691 = vmatmul.mubr.f32.vlgmr.msra.gmra.mxu0 %v3740_v14  ;;  %v7575_v11 = vsub.f32 %v4589_v10, %v4622_v48  ;;  %v4584_v14 = vpop.permute.xlu1 %4583 }
 0x43d   : > { %6699 = vmatpush3.msra.mxu0 %v7519_v18  ;;  %6700 = vmatprep.mubr.msk.f32.mxu0 %vm6973_vm0, %v6972_v0  ;;  %v4587_v16 = vsel %vm1835_vm2, %v4584_v14, 0 }
 0x43e   : > { %6708 = vmatprep.subr.mxu0 %v6972_v0  ;;  %v4700_v7 = vand.u32 4294901760, %v7575_v11  ;;  %v4657_v22 = vand.u32 4294901760, %v4587_v16 }
 0x440   : > { %v4701_v25 = vsub.f32 %v7575_v11, %v4700_v7  ;;  %v4658_v17 = vsub.f32 %v4587_v16, %v4657_v22 }
 0x4e0   : > { %v3366_v28 = vpop.f32.mrf.mxu1 }
 0x4e2   : > { %v6647_v29 = vpop.f32.mrf.mxu1 }
 0x4e4   : > { %v3514_v31 = vpop.f32.mrf.mxu1 }
 0x4e6   : > { %v6657_v32 = vpop.f32.mrf.mxu1 }
 0x4e8   : > { %v3290_v33 = vpop.f32.mrf.mxu0  ;;  %v3660_v34 = vpop.f32.mrf.mxu1 }
 0x4e9   : > { %v3367_v35 = vadd.f32 %v3366_v28, %v3290_v33  ;;  %v4702_v28 = vand.u32 4294901760, %v4701_v25 }
 0x4ea   : > { %v6642_v36 = vpop.f32.mrf.mxu0  ;;  %v6667_v37 = vpop.f32.mrf.mxu1 }
 0x4ec   : > { %v3440_v38 = vpop.f32.mrf.mxu0  ;;  %v3822_v39 = vpop.f32.mrf.mxu1 }
 0x4ed   : > { %v3441_v40 = vadd.f32 %v3440_v38, %v3367_v35 }
 0x4ee   : > { %v6652_v41 = vpop.f32.mrf.mxu0  ;;  %v6677_v42 = vpop.f32.mrf.mxu1 }
 0x4ef   : > { %v3515_v43 = vadd.f32 %v3514_v31, %v3441_v40  ;;  %v4659_v31 = vand.u32 4294901760, %v4658_v17 }
 0x4f0   : > { %v3588_v44 = vpop.f32.mrf.mxu0  ;;  %v3970_v46 = vpop.f32.mrf.mxu1 }
 0x4f1   : > { %v3589_v47 = vadd.f32 %v3588_v44, %v3515_v43  ;;  %v4660_v32 = vsub.f32 %v4658_v17, %v4659_v31 }
 0x4f2   : > { %v6662_v49 = vpop.f32.mrf.mxu0  ;;  %v6687_v50 = vpop.f32.mrf.mxu1 }
 0x4f3   : > { %v7567_v51 = vadd.f32 %v3660_v34, %v3589_v47 }
 0x4f4   : > { %v3746_v52 = vpop.f32.mrf.mxu0  ;;  %v4116_v53 = vpop.f32.mrf.mxu1 }
 0x4f5   : > { %v3823_v56 = vadd.f32 %v3822_v39, %v3746_v52 }
 0x4f6   : > { %v6672_v54 = vpop.f32.mrf.mxu0  ;;  %v6697_v55 = vpop.f32.mrf.mxu1 }
 0x4f8   : > { %v3896_v57 = vpop.f32.mrf.mxu0 }
 0x4f9   : > { %v3897_v58 = vadd.f32 %v3896_v57, %v3823_v56 }
 0x4fa   : > { %v6682_v59 = vpop.f32.mrf.mxu0 }
 0x4fb   : > { %v3971_v60 = vadd.f32 %v3970_v46, %v3897_v58 }
 0x4fc   : > { %v4044_v61 = vpop.f32.mrf.mxu0 }
 0x4fd   : > { %v4045_v62 = vadd.f32 %v4044_v61, %v3971_v60 }
 0x4fe   : > { %v6692_v1 = vpop.f32.mrf.mxu0 }
 0x4ff   : > { %v4117_v2 = vadd.f32 %v4116_v53, %v4045_v62 }
 0x501   : > { %v4120_v3 = vsel %vm1835_vm2, %v4117_v2, -inf }
 0x502   : > { %4121 = vmax.xlane.f32.xlu0 %v4120_v3 }
 0x518   : > { %5046 = vrot.lane.b32.xlu0 %v7415_v30, %s6976_s12 }
 0x537   : > { %3209 = vadd.xlane.f32.xlu0 %v3208_v4 }
 0x58b   : > { %v4122_v6 = vpop.xlane.xlu0 %4121 }
 0x58c   : > { %v4123_v8 = vsub.f32 %v4117_v2, %v4122_v6 }
 0x58e   : > { %v4124_v9 = vmul.f32 1.442695, %v4123_v8 }
 0x58f   : > { %v5047_v20 = vpop.permute.xlu0 %5046 }
 0x590   : > { %6903 = vpow2.f32 %v4124_v9  ;;  %v7588_v26 = vand.u32 4294901760, %v5047_v20 }
 0x592   : > { %v7595_v29 = vsub.f32 %v5047_v20, %v7588_v26 }
 0x59d   : > { %v7577_v13 = vpop.eup %6903 }
 0x59e   : > { %v4133_v30 = vsel %vm1835_vm2, %v7577_v13, 0 }
 0x59f   : > { %v4201_v15 = vand.u32 4294901760, %v4133_v30 }
 0x5a1   : > { %v4202_v21 = vsub.f32 %v4133_v30, %v4201_v15  ;;  %6706 = vmatmul.mubr.f32.vlgmr.msra.gmra.mxu1 %v4201_v15 }
 0x5a2   : > { %6714 = vmatpush3.msra.mxu1 %v7519_v18  ;;  %6715 = vmatprep.mubr.msk.f32.mxu1 %vm6973_vm0, %v6972_v0 }
 0x5a3   : > { %6723 = vmatprep.subr.mxu1 %v6972_v0  ;;  %v4203_v23 = vand.u32 4294901760, %v4202_v21 }
 0x5a5   : > { %6716 = vmatmul.mubr.f32.vlgmr.msra.gmra.mxu1 %v4203_v23  ;;  %v4204_v27 = vsub.f32 %v4202_v21, %v4203_v23 }
 0x5a6   : > { %6724 = vmatpush3.msra.mxu1 %v7519_v18  ;;  %6725 = vmatprep.mubr.msk.f32.mxu1 %vm6973_vm0, %v6972_v0  ;;  %v5161_v18 = vand.u32 4294901760, %v7595_v29 }
 0x5a7   : > { %6733 = vmatprep.subr.mxu1 %v6972_v0  ;;  %v4205_v19 = vand.u32 4294901760, %v4204_v27  ;;  %v2294_v27 = vsel %vm1835_vm2, %v7439_v63, 0.0 }
 0x5a8   : > { %v5162_v33 = vsub.f32 %v7595_v29, %v5161_v18 }
 0x5a9   : > { %6701 = vmatmul.mubr.f32.vlgmr.msra.gmra.mxu0 %v4205_v19  ;;  %6726 = vmatmul.mubr.f32.vlgmr.msra.gmra.mxu1 %v4201_v15 }
 0x5aa   : > { %6709 = vmatpush3.msra.mxu0 %v7526_v24  ;;  %6734 = vmatpush3.xpose.msra.mxu1 %v4702_v28  ;;  %v4661_v24 = vand.u32 4294901760, %v4660_v32  ;;  %v5519_v32 = vld [vmem:[#allocation2 + $0x10] sm:$0xff] }
 0x5ab   : > { %6710 = vmatprep.mubr.msk.f32.mxu0 %vm6973_vm0, %v6972_v0  ;;  %6718 = vmatprep.subr.mxu0 %v6972_v0 }
 0x5ac   : > { %6735 = vmatprep.mubr.msk.f32.mxu1 %vm6973_vm0, %v6972_v0  ;;  %6743 = vmatprep.subr.mxu1 %v6972_v0 }
 0x5ad   : > { %6711 = vmatmul.mubr.f32.vlgmr.msra.gmra.mxu0 %v4202_v21  ;;  %6736 = vmatmul.mubr.f32.vlgmr.msra.gmra.mxu1 %v4657_v22 }
 0x5ae   : > { %6719 = vmatpush3.msra.mxu0 %v4244_v12  ;;  %6744 = vmatpush3.xpose.msra.mxu1 %v4622_v48  ;;  %v5163_v12 = vand.u32 4294901760, %v5162_v33 }
 0x5af   : > { %6720 = vmatprep.mubr.msk.f32.mxu0 %vm6973_vm0, %v6972_v0  ;;  %6728 = vmatprep.subr.mxu0 %v6972_v0 }
 0x5b0   : > { %6745 = vmatprep.mubr.msk.f32.mxu1 %vm6973_vm0, %v6972_v0  ;;  %6753 = vmatprep.subr.mxu1 %v6972_v0 }
 0x5b1   : > { %6721 = vmatmul.mubr.f32.vlgmr.msra.gmra.mxu0 %v4201_v15  ;;  %6746 = vmatmul.mubr.f32.vlgmr.msra.gmra.mxu1 %v4659_v31  ;;  %v5520_v31 = vld [vmem:[#allocation2 + $0x18] sm:$0xff] }
 0x5b2   : > { %6729 = vmatpush3.xpose.msra.mxu0 %v4622_v48  ;;  %6754 = vmatpush3.xpose.msra.mxu1 %v4622_v48  ;;  %v4126_v48 = vsel %vm1835_vm2, %v7577_v13, 0.0  ;;  %v7665_v33 = vand.u32 4294901760, %v5520_v31 }
 0x5b3   : > { %6730 = vmatprep.mubr.msk.f32.mxu0 %vm6973_vm0, %v6972_v0  ;;  %6738 = vmatprep.subr.mxu0 %v6972_v0 }
 0x5b4   : > { %6755 = vmatprep.mubr.msk.f32.mxu1 %vm6973_vm0, %v6972_v0  ;;  %6763 = vmatprep.subr.mxu1 %v6972_v0 }
 0x5b5   : > { %6731 = vmatmul.mubr.f32.vlgmr.msra.gmra.mxu0 %v4661_v24  ;;  %6756 = vmatmul.mubr.f32.vlgmr.msra.gmra.mxu1 %v4657_v22 }
 0x5b6   : > { %6739 = vmatpush3.xpose.msra.mxu0 %v7575_v11  ;;  %6764 = vmatpush3.msra.mxu1 %v5163_v12 }
 0x5b7   : > { %6740 = vmatprep.mubr.msk.f32.mxu0 %vm6973_vm0, %v6972_v0  ;;  %6748 = vmatprep.subr.mxu0 %v6972_v0 }
 0x5b8   : > { %6765 = vmatprep.mubr.msk.f32.mxu1 %vm6973_vm0, %v6972_v0  ;;  %6773 = vmatprep.subr.mxu1 %v6972_v0 }
 0x5b9   : > { %6741 = vmatmul.mubr.f32.vlgmr.msra.gmra.mxu0 %v4658_v17 }
 0x5ba   : > { %6749 = vmatpush3.xpose.msra.mxu0 %v4700_v7  ;;  %6750 = vmatprep.mubr.msk.f32.mxu0 %vm6973_vm0, %v6972_v0 }
 0x5bb   : > { %6758 = vmatprep.subr.mxu0 %v6972_v0 }
 0x5bd   : > { %6751 = vmatmul.mubr.f32.vlgmr.msra.gmra.mxu0 %v4657_v22 }
 0x5be   : > { %6759 = vmatpush3.msra.mxu0 %v7588_v26  ;;  %6760 = vmatprep.mubr.msk.f32.mxu0 %vm6973_vm0, %v6972_v0 }
 0x5bf   : > { %6768 = vmatprep.subr.mxu0 %v6972_v0 }
 0x5c0   : > { %v3210_v22 = vpop.xlane.xlu0 %3209 }
 0x661   : > { %v4283_v34 = vpop.f32.mrf.mxu1 }
 0x663   : > { %v6707_v35 = vpop.f32.mrf.mxu1 }
 0x665   : > { %v4431_v36 = vpop.f32.mrf.mxu1 }
 0x667   : > { %v6717_v37 = vpop.f32.mrf.mxu1 }
 0x669   : > { %v4207_v38 = vpop.f32.mrf.mxu0  ;;  %v4577_v39 = vpop.f32.mrf.mxu1 }
 0x66a   : > { %v4284_v40 = vadd.f32 %v4283_v34, %v4207_v38 }
 0x66b   : > { %v6702_v41 = vpop.f32.mrf.mxu0  ;;  %v6727_v42 = vpop.f32.mrf.mxu1 }
 0x66c   : > { %v5517_v42 = vld [vmem:[#allocation2] sm:$0xff] }
 0x66d   : > { %v4357_v43 = vpop.f32.mrf.mxu0  ;;  %v4739_v44 = vpop.f32.mrf.mxu1 }
 0x66e   : > { %v4358_v46 = vadd.f32 %v4357_v43, %v4284_v40 }
 0x66f   : > { %v6712_v47 = vpop.f32.mrf.mxu0  ;;  %v6737_v49 = vpop.f32.mrf.mxu1 }
 0x670   : > { %v4432_v50 = vadd.f32 %v4431_v36, %v4358_v46 }
 0x671   : > { %v4505_v52 = vpop.f32.mrf.mxu0  ;;  %v4887_v53 = vpop.f32.mrf.mxu1 }
 0x672   : > { %v4506_v54 = vadd.f32 %v4505_v52, %v4432_v50 }
 0x673   : > { %v6722_v55 = vpop.f32.mrf.mxu0  ;;  %v6747_v56 = vpop.f32.mrf.mxu1 }
 0x674   : > { %v4578_v57 = vadd.f32 %v4577_v39, %v4506_v54  ;;  %v5518_v39 = vld [vmem:[#allocation2 + $0x8] sm:$0xff] }
 0x675   : > { %v4663_v58 = vpop.f32.mrf.mxu0  ;;  %v5033_v59 = vpop.f32.mrf.mxu1  ;;  %v7689_v40 = vand.u32 4294901760, %v5518_v39 }
 0x676   : > { %v4740_v62 = vadd.f32 %v4739_v44, %v4663_v58  ;;  %v7694_v44 = vand.u32 4294901760, %v5517_v42 }
 0x677   : > { %v6732_v60 = vpop.f32.mrf.mxu0  ;;  %v6757_v61 = vpop.f32.mrf.mxu1  ;;  %v7692_v43 = vsub.f32 %v5518_v39, %v7689_v40 }
 0x678   : > { %v7700_v50 = vsub.f32 %v5517_v42, %v7694_v44 }
 0x679   : > { %v4813_v1 = vpop.f32.mrf.mxu0  ;;  %v5644_v49 = vand.u32 4294901760, %v7692_v43 }
 0x67a   : > { %v4814_v2 = vadd.f32 %v4813_v1, %v4740_v62  ;;  %v5651_v54 = vand.u32 4294901760, %v7700_v50 }
 0x67b   : > { %v6742_v3 = vpop.f32.mrf.mxu0 }
 0x67c   : > { %v4888_v4 = vadd.f32 %v4887_v53, %v4814_v2  ;;  %v5645_v53 = vsub.f32 %v7692_v43, %v5644_v49  ;;  %v5652_v58 = vsub.f32 %v7700_v50, %v5651_v54 }
 0x67d   : > { %v4961_v6 = vpop.f32.mrf.mxu0 }
 0x67e   : > { %v4962_v8 = vadd.f32 %v4961_v6, %v4888_v4  ;;  %v5653_v62 = vand.u32 4294901760, %v5652_v58 }
 0x67f   : > { %v6752_v9 = vpop.f32.mrf.mxu0 }
 0x680   : > { %v5034_v5 = vadd.f32 %v5033_v59, %v4962_v8 }
 0x682   : > { %v5037_v10 = vsel %vm1835_vm2, %v5034_v5, -inf }
 0x683   : > { %5038 = vmax.xlane.f32.xlu1 %v5037_v10 }
 0x687   : > { %4127 = vadd.xlane.f32.xlu1 %v4126_v48 }
 0x70c   : > { %v5039_v11 = vpop.xlane.xlu1 %5038 }
 0x70d   : > { %v5040_v14 = vsub.f32 %v5034_v5, %v5039_v11 }
 0x70f   : > { %v5041_v30 = vmul.f32 1.442695, %v5040_v14 }
 0x710   : > { %v4128_v15 = vpop.xlane.xlu1 %4127 }
 0x711   : > { %6905 = vpow2.f32 %v5041_v30 }
 0x712   : > { %6907 = vrcp.f32 %v4128_v15 }
 0x713   : > { %6909 = vrcp.f32 %v3210_v22 }
 0x71e   : > { %v6906_v7 = vpop.eup %6905 }
 0x71f   : > { %v6908_v16 = vpop.eup %6907  ;;  %v5043_v20 = vsel %vm1835_vm2, %v6906_v7, 0.0  ;;  %v5050_v21 = vsel %vm1835_vm2, %v6906_v7, 0 }
 0x720   : > { %5044 = vadd.xlane.f32.xlu1 %v5043_v20  ;;  %v4582_v23 = vmul.f32 %v6908_v16, %v4578_v57  ;;  %v5118_v25 = vand.u32 4294901760, %v5050_v21  ;;  %v6910_v63 = vpop.eup %6909  ;;  %v5646_v57 = vand.u32 4294901760, %v5645_v53 }
 0x722   : > { %5505 = vrot.lane.b32.xlu0 %v4582_v23, %s6977_s13  ;;  %v5119_v13 = vsub.f32 %v5050_v21, %v5118_v25  ;;  %6766 = vmatmul.mubr.f32.vlgmr.msra.gmra.mxu1 %v5118_v25 }
 0x723   : > { %6774 = vmatpush3.msra.mxu1 %v7588_v26  ;;  %6775 = vmatprep.mubr.msk.f32.mxu1 %vm6973_vm0, %v6972_v0 }
 0x724   : > { %2295 = vadd.xlane.f32.xlu1 %v2294_v27  ;;  %6783 = vmatprep.subr.mxu1 %v6972_v0  ;;  %v5120_v17 = vand.u32 4294901760, %v5119_v13 }
 0x726   : > { %6776 = vmatmul.mubr.f32.vlgmr.msra.gmra.mxu1 %v5120_v17  ;;  %v5121_v19 = vsub.f32 %v5119_v13, %v5120_v17 }
 0x727   : > { %6784 = vmatpush3.msra.mxu1 %v7588_v26  ;;  %6785 = vmatprep.mubr.msk.f32.mxu1 %vm6973_vm0, %v6972_v0  ;;  %v3665_v26 = vmul.f32 %v6910_v63, %v7567_v51 }
 0x728   : > { %v5122_v28 = vand.u32 4294901760, %v5121_v19  ;;  %6799 = vmatprep.subr.mxu1 %v6972_v0 }
 0x72a   : > { %6761 = vmatmul.mubr.f32.vlgmr.msra.gmra.mxu0 %v5122_v28  ;;  %6786 = vmatmul.mubr.f32.vlgmr.msra.gmra.mxu1 %v5118_v25 }
 0x72b   : > { %6769 = vmatpush3.msra.mxu0 %v7595_v29  ;;  %6770 = vmatprep.mubr.msk.f32.mxu0 %vm6973_vm0, %v6972_v0  ;;  %v7667_v29 = vand.u32 4294901760, %v5519_v32 }
 0x72c   : > { %6778 = vmatprep.subr.mxu0 %v6972_v0  ;;  %6807 = vmatprep.mubr.msk.f32.mxu1 %vm6973_vm0, %v6972_v0 }
 0x72d   : > { %v7673_v24 = vsub.f32 %v5519_v32, %v7667_v29 }
 0x72e   : > { %6771 = vmatmul.mubr.f32.vlgmr.msra.gmra.mxu0 %v5119_v13 }
 0x72f   : > { %6779 = vmatpush3.msra.mxu0 %v5161_v18  ;;  %6780 = vmatprep.mubr.msk.f32.mxu0 %vm6973_vm0, %v6972_v0  ;;  %v7670_v18 = vsub.f32 %v5520_v31, %v7665_v33  ;;  %v5637_v12 = vand.u32 4294901760, %v7673_v24 }
 0x730   : > { %6788 = vmatprep.subr.mxu0 %v6972_v0 }
 0x731   : > { %v5630_v51 = vand.u32 4294901760, %v7670_v18  ;;  %v5638_v35 = vsub.f32 %v7673_v24, %v5637_v12 }
 0x732   : > { %6781 = vmatmul.mubr.f32.vlgmr.msra.gmra.mxu0 %v5118_v25 }
 0x733   : > { %6796 = vmatprep.mubr.msk.f32.mxu0 %vm6973_vm0, %v6972_v0  ;;  %6789 = vmatpush3.msra.mxu0 %v7665_v33  ;;  %v5631_v34 = vsub.f32 %v7670_v18, %v5630_v51  ;;  %v5639_v37 = vand.u32 4294901760, %v5638_v35 }
 0x734   : > { %6790 = vmatprep.subr.mxu0 %v6972_v0 }
 0x735   : > { %5501 = vrot.lane.b32.xlu1 %v3665_v26, %s6978_s14  ;;  %6791 = vmatpush3.msra.mxu0 %v7667_v29  ;;  %v5632_v36 = vand.u32 4294901760, %v5631_v34 }
 0x736   : > { %6792 = vmatprep.subr.mxu0 %v6972_v0 }
 0x737   : > { %6800 = vmatpush3.msra.mxu1 %v5632_v36  ;;  %6793 = vmatpush3.msra.mxu0 %v7689_v40 }
 0x738   : > { %6801 = vmatprep.subr.mxu1 %v6972_v0  ;;  %6794 = vmatprep.subr.mxu0 %v6972_v0 }
 0x739   : > { %6802 = vmatpush3.msra.mxu1 %v5639_v37  ;;  %6795 = vmatpush3.msra.mxu0 %v7694_v44 }
 0x73a   : > { %6803 = vmatprep.subr.mxu1 %v6972_v0  ;;  %6810 = vmatprep.subr.mxu0 %v6972_v0 }
 0x73b   : > { %6804 = vmatpush3.msra.mxu1 %v5646_v57 }
 0x73c   : > { %6805 = vmatprep.subr.mxu1 %v6972_v0 }
 0x73d   : > { %6806 = vmatpush3.msra.mxu1 %v5653_v62 }
 0x73e   : > { %6821 = vmatprep.subr.mxu1 %v6972_v0 }
 0x794   : > { %v5506_v16 = vpop.permute.xlu0 %5505 }
 0x7a9   : > { %v5045_v46 = vpop.xlane.xlu1 %5044 }
 0x7aa   : > { %6911 = vrcp.f32 %v5045_v46 }
 0x7ad   : > { %v2296_v11 = vpop.xlane.xlu1 %2295 }
 0x7ae   : > { %6913 = vrcp.f32 %v2296_v11 }
 0x7b1   : > { %v5502_v15 = vpop.permute.xlu1 %5501 }
 0x7b7   : > { %v6912_v10 = vpop.eup %6911 }
 0x7bb   : > { %v6914_v14 = vpop.eup %6913 }
 0x7bc   : > { %v2747_v30 = vmul.f32 %v6914_v14, %v7496_v45 }
 0x7be   : > { %v5512_v7 = vsel %vm1835_vm2, %v2747_v30, %v5502_v15 }
 0x7bf   : > { %v5514_v20 = vsel %vm5513_vm3, %v5512_v7, %v5506_v16 }
 0x7e2   : > { %v5200_v38 = vpop.f32.mrf.mxu1 }
 0x7e4   : > { %v6767_v41 = vpop.f32.mrf.mxu1 }
 0x7e6   : > { %v5348_v47 = vpop.f32.mrf.mxu1 }
 0x7e8   : > { %v6777_v52 = vpop.f32.mrf.mxu1 }
 0x7ea   : > { %v5124_v55 = vpop.f32.mrf.mxu0  ;;  %v5494_v56 = vpop.f32.mrf.mxu1 }
 0x7eb   : > { %v5201_v61 = vadd.f32 %v5200_v38, %v5124_v55 }
 0x7ec   : > { %v6762_v59 = vpop.f32.mrf.mxu0  ;;  %v6787_v60 = vpop.f32.mrf.mxu1 }
 0x7ee   : > { %v5274_v1 = vpop.f32.mrf.mxu0 }
 0x7ef   : > { %v5275_v2 = vadd.f32 %v5274_v1, %v5201_v61 }
 0x7f0   : > { %v6772_v3 = vpop.f32.mrf.mxu0 }
 0x7f1   : > { %v5349_v4 = vadd.f32 %v5348_v47, %v5275_v2 }
 0x7f2   : > { %v5422_v6 = vpop.f32.mrf.mxu0 }
 0x7f3   : > { %v5423_v8 = vadd.f32 %v5422_v6, %v5349_v4 }
 0x7f4   : > { %v6782_v9 = vpop.f32.mrf.mxu0 }
 0x7f5   : > { %v5495_v5 = vadd.f32 %v5494_v56, %v5423_v8 }
 0x7f7   : > { %v5499_v48 = vmul.f32 %v6912_v10, %v5495_v5 }
 0x7f9   : > { %5509 = vrot.lane.b32.xlu1 %v5499_v48, %s6979_s16 }
 0x86b   : > { %v5510_v21 = vpop.permute.xlu1 %5509 }
 0x86c   : > { %v5516_v22 = vsel %vm5515_vm4, %v5514_v20, %v5510_v21 }
 0x86d   : > { %v5522_v23 = vsel %vm361_vm1, %v5516_v22, 0 }
 0x86e   : > { %v5593_v25 = vand.u32 4294901760, %v5522_v23 }
 0x870   : > { %v5594_v13 = vsub.f32 %v5522_v23, %v5593_v25  ;;  %6808 = vmatmul.mubr.f32.vlgmr.msra.gmra.mxu1 %v5593_v25 }
 0x871   : > { %6822 = vmatpush3.msra.mxu1 %v7665_v33  ;;  %6829 = vmatprep.mubr.msk.f32.mxu1 %vm6973_vm0, %v6972_v0 }
 0x872   : > { %6823 = vmatprep.subr.mxu1 %v6972_v0  ;;  %v5595_v45 = vand.u32 4294901760, %v5594_v13 }
 0x873   : > { %6824 = vmatpush3.msra.mxu1 %v7667_v29 }
 0x874   : > { %6825 = vmatprep.subr.mxu1 %v6972_v0  ;;  %v5596_v27 = vsub.f32 %v5594_v13, %v5595_v45 }
 0x875   : > { %6826 = vmatpush3.msra.mxu1 %v7689_v40 }
 0x876   : > { %6827 = vmatprep.subr.mxu1 %v6972_v0  ;;  %v5597_v17 = vand.u32 4294901760, %v5596_v27 }
 0x877   : > { %6828 = vmatpush3.msra.mxu1 %v7694_v44 }
 0x878   : > { %6830 = vmatmul.mubr.f32.vlgmr.msra.gmra.mxu1 %v5595_v45  ;;  %6843 = vmatprep.subr.mxu1 %v6972_v0 }
 0x879   : > { %6797 = vmatmul.mubr.f32.vlgmr.msra.gmra.mxu0 %v5597_v17  ;;  %6844 = vmatpush3.msra.mxu1 %v7665_v33 }
 0x87a   : > { %6811 = vmatpush3.msra.mxu0 %v7670_v18  ;;  %6845 = vmatprep.subr.mxu1 %v6972_v0 }
 0x87b   : > { %6812 = vmatprep.subr.mxu0 %v6972_v0  ;;  %6846 = vmatpush3.msra.mxu1 %v7667_v29 }
 0x87c   : > { %6813 = vmatpush3.msra.mxu0 %v7673_v24  ;;  %6847 = vmatprep.subr.mxu1 %v6972_v0 }
 0x87d   : > { %6814 = vmatprep.subr.mxu0 %v6972_v0  ;;  %6848 = vmatpush3.msra.mxu1 %v7689_v40 }
 0x87e   : > { %6815 = vmatpush3.msra.mxu0 %v7692_v43  ;;  %6849 = vmatprep.subr.mxu1 %v6972_v0 }
 0x87f   : > { %6816 = vmatprep.subr.mxu0 %v6972_v0  ;;  %6818 = vmatprep.mubr.msk.f32.mxu0 %vm6973_vm0, %v6972_v0 }
 0x880   : > { %6817 = vmatpush3.msra.mxu0 %v7700_v50  ;;  %6850 = vmatpush3.msra.mxu1 %v7694_v44 }
 0x881   : > { %6851 = vmatprep.mubr.msk.f32.mxu1 %vm6973_vm0, %v6972_v0  ;;  %6819 = vmatmul.mubr.f32.vlgmr.msra.gmra.mxu0 %v5594_v13 }
 0x882   : > { %6832 = vmatprep.subr.mxu0 %v6972_v0  ;;  %6852 = vmatmul.mubr.f32.vlgmr.msra.gmra.mxu1 %v5593_v25 }
 0x883   : > { %6833 = vmatpush3.msra.mxu0 %v5630_v51  ;;  %6840 = vmatprep.mubr.msk.f32.mxu0 %vm6973_vm0, %v6972_v0 }
 0x884   : > { %6834 = vmatprep.subr.mxu0 %v6972_v0 }
 0x885   : > { %6835 = vmatpush3.msra.mxu0 %v5637_v12 }
 0x886   : > { %6836 = vmatprep.subr.mxu0 %v6972_v0 }
 0x887   : > { %6837 = vmatpush3.msra.mxu0 %v5644_v49 }
 0x888   : > { %6838 = vmatprep.subr.mxu0 %v6972_v0 }
 0x889   : > { %6839 = vmatpush3.msra.mxu0 %v5651_v54 }
 0x88a   : > { %6841 = vmatmul.mubr.f32.vlgmr.msra.gmra.mxu0 %v5593_v25 }
 0x930   : > { %v5690_v19 = vpop.f32.mrf.mxu1 }
 0x932   : > { %v6809_v28 = vpop.f32.mrf.mxu1 }
 0x938   : > { %v5847_v63 = vpop.f32.mrf.mxu1 }
 0x939   : > { %v5599_v26 = vpop.f32.mrf.mxu0 }
 0x93a   : > { %v6831_v31 = vpop.f32.mrf.mxu1  ;;  %v5691_v18 = vadd.f32 %v5690_v19, %v5599_v26 }
 0x93b   : > { %v6798_v32 = vpop.f32.mrf.mxu0 }
 0x941   : > { %v5770_v33 = vpop.f32.mrf.mxu0 }
 0x942   : > { %v6005_v29 = vpop.f32.mrf.mxu1  ;;  %v5771_v12 = vadd.f32 %v5770_v33, %v5691_v18 }
 0x943   : > { %v6820_v24 = vpop.f32.mrf.mxu0 }
 0x944   : > { %v6853_v51 = vpop.f32.mrf.mxu1  ;;  %v5848_v34 = vadd.f32 %v5847_v63, %v5771_v12 }
 0x94a   : > { %v5930_v35 = vpop.f32.mrf.mxu0 }
 0x94b   : > { %v5931_v0 = vadd.f32 %v5930_v35, %v5848_v34 }
 0x94c   : > { %v6842_v36 = vpop.f32.mrf.mxu0 }
 0x94d   : > { %v6006_v37 = vadd.f32 %v6005_v29, %v5931_v0 }
 0x94f   : > { %6009 = vst.msk [vmem:[%s353_s19] sm:$0xff] %vm361_vm1, %v6006_v37 }
 0x950 PF: > { %s18_s26 = sadd.s32 1, %s6967_s26   ;;  %s7782_s24 = smov %s6963_s25 }
 0x951   : > { %p15_p2 = scmp.ge.s32.totalorder %s18_s26, 4   ;;  %s7783_s25 = smov %s7785_s28 }
 0x953   :  { %17 = sbr.rel (!%p15_p2) target bundleno = 2 (0x2), region = 89 }
 0x958   :  { %6035 = vsyncpa [#allocation3], 1 }
 0x959   :  { %6037 = vsyncpa [#allocation3 + $0x1], 1 }

</bundles_post_ra>
